<compile_context>
chip_gen: v6e
topology: v6e:2x2x1
jax: 0.10.0
libtpu: 0.0.40
codegen_flags: <defaults>
</compile_context>

<pallas_src>
import jax
import jax.numpy as jnp
import numpy as np
from jax.experimental import pallas as pl
from jax.experimental.pallas import tpu as pltpu


def _round_up(n, m):
    return ((n + m - 1) // m) * m


def _summation_embedder_kernel(tok_ref, meta_ref, table_ref, out_ref):
    """One grid step handles a (TM, C) block of raw token rows.

    tok_ref   : (TM, C)    int32   raw per-codebook token ids
    meta_ref  : (2, SumV)  int32   row 0: owning-codebook id per vocab lane,
                                   row 1: local index within that codebook
    table_ref : (SumV, D)  float32 all codebook tables stacked on the vocab axis
    out_ref   : (TM, D)    float32 summed embeddings for this block of rows
    """
    toks = tok_ref[...]            # (TM, C) int32
    table = table_ref[...]         # (SumV, D) float32
    cb = meta_ref[0:1, :]          # (1, SumV) codebook id owning each vocab lane
    local = meta_ref[1:2, :]       # (1, SumV) local index within that codebook
    _, c = toks.shape

    # sel[r, v] = toks[r, cb[v]] : (C-1)=3 full-width selects, then one full-width
    # compare + cast -> ~5 VPU passes over (TM, SumV) instead of
    # 4 compares + 3 ORs + cast (~8).  Vocab ranges are disjoint, so exactly one
    # lane per codebook matches per row -> the matmul sums all C embeddings.
    sel = toks[:, c - 1][:, None]
    for i in range(c - 2, -1, -1):
        sel = jnp.where(cb == i, toks[:, i][:, None], sel)
    multihot = (sel == local).astype(table.dtype)

    # Single MXU matmul gathers AND sums.  Precision pinned so the f32 table is
    # never truncated to a single bf16 pass by a default-precision lowering.
    out_ref[...] = jnp.dot(
        multihot,
        table,
        preferred_element_type=jnp.float32,
        precision=jax.lax.Precision.HIGHEST,
    ).astype(out_ref.dtype)


def summation_embedder(x, tables, *, tm=2048):
    """x: (B, T, C) int tokens; tables: list of C (V_i, D) float32 embedding tables."""
    B, T, C = x.shape
    assert C == len(tables)
    D = tables[0].shape[1]
    for t in tables:
        assert t.shape[1] == D

    vocab_sizes = [int(t.shape[0]) for t in tables]
    total_v = sum(vocab_sizes)

    # Stacked table + per-lane (codebook id, local index) metadata.  The cumulative
    # vocab offsets are folded into the metadata, so raw token ids go in as-is.
    stacked_table = jnp.concatenate([t.astype(jnp.float32) for t in tables], axis=0)
    lane_cb = np.concatenate(
        [np.full(v, i, dtype=np.int32) for i, v in enumerate(vocab_sizes)])
    lane_local = np.concatenate(
        [np.arange(v, dtype=np.int32) for v in vocab_sizes])
    meta = jnp.asarray(np.stack([lane_cb, lane_local], axis=0))     # (2, SumV) int32

    N = B * T
    tok = x.reshape(N, C).astype(jnp.int32)

    # Row tile: large to amortize the ~0.35 us/step pipeline overhead, capped at
    # 2048 (keeps VMEM ~10-12 MiB -> safe on v7x's 64 MiB physical VMEM), multiple
    # of 8 so the ragged last block is legal.  For small N, shrink the tile so the
    # single "parallel" grid axis has >= 2 steps (both TensorCores on v7x get work).
    if N <= 8:
        tm = N                                    # single tiny block (full-dim block)
    else:
        tm = max(8, min(_round_up(tm, 8), 2048))
        if tm >= N:
            tm = max(8, _round_up(pl.cdiv(N, 2), 8))
    grid = pl.cdiv(N, tm)

    out = pl.pallas_call(
        _summation_embedder_kernel,
        out_shape=jax.ShapeDtypeStruct((N, D), jnp.float32),   # no pad, no out[:N] copy
        grid_spec=pltpu.PrefetchScalarGridSpec(
            num_scalar_prefetch=0,
            grid=(grid,),
            in_specs=[
                pl.BlockSpec((tm, C), lambda r: (r, 0)),
                # Grid-invariant lane metadata and stacked table (resident each step).
                pl.BlockSpec((2, total_v), lambda r: (0, 0)),
                pl.BlockSpec((total_v, D), lambda r: (0, 0)),
            ],
            out_specs=pl.BlockSpec((tm, D), lambda r: (r, 0)),
        ),
        compiler_params=pltpu.CompilerParams(
            dimension_semantics=("parallel",),
            vmem_limit_bytes=32 << 20,
        ),
    )(tok, meta, stacked_table)
    return out.reshape(B, T, D)


def summation_embedder_ref(x, tables):
    """Pure-JAX reference (mirrors the PyTorch forward)."""
    emb_list = [jnp.take(tab, x[..., i], axis=0) for i, tab in enumerate(tables)]
    stacked = jnp.stack(emb_list, axis=2)      # B x T x C x D
    return jnp.sum(stacked, axis=2)            # B x T x D


if __name__ == "__main__":
    # Small, module-consistent shapes: input_keys=4 codebooks, dim=256 (module
    # default -> lane-dense output), small vocab=64 per codebook.
    B, T, C, D = 2, 11, 4, 256
    vocab_sizes = [64, 64, 64, 64]

    key = jax.random.PRNGKey(0)
    k_tok, *k_tabs = jax.random.split(key, 1 + C)

    # Deterministic synthetic embedding tables (nn.Embedding ~ N(0,1) init).
    tables = [
        jax.random.normal(k, (v, D), dtype=jnp.float32)
        for k, v in zip(k_tabs, vocab_sizes)
    ]
    # Tokens: B x T x 4, each column bounded by its codebook's vocab size.
    cols = [
        jax.random.randint(jax.random.fold_in(k_tok, i), (B, T), 0, vocab_sizes[i])
        for i in range(C)
    ]
    x = jnp.stack(cols, axis=-1).astype(jnp.int32)   # (B, T, 4)

    # N = 22 rows -> auto tile tm=16, 2 "parallel" grid steps (shards across both
    # TensorCores on v7x) with a ragged 6-row tail handled by masked writeback
    # (no token pad, no output slice copy).  Production uses tm up to 2048.
    out = summation_embedder(x, tables)
    out = jax.block_until_ready(out)

    ref = summation_embedder_ref(x, tables)
    assert out.shape == (B, T, D)
    assert jnp.allclose(out, ref, atol=1e-5, rtol=1e-5), "mismatch vs reference"

    print("KERNEL_OK")
</pallas_src>

<mosaic_0001>
module attributes {stable_mosaic.version = 11 : i64} {
  func.func @_summation_embedder_kernel(%arg0: i32, %arg1: memref<16x4xi32, #tpu.memory_space<vmem>>, %arg2: memref<2x256xi32, #tpu.memory_space<vmem>>, %arg3: memref<256x256xf32, #tpu.memory_space<vmem>>, %arg4: memref<16x256xf32, #tpu.memory_space<vmem>>) attributes {dimension_semantics = [#tpu.dimension_semantics<parallel>], iteration_bounds = array<i64: 2>, scalar_prefetch = 0 : i64, scratch_operands = 0 : i64, tpu.core_type = #tpu.core_type<tc>, window_params = [{transform_indices = @transform_0, window_bounds = array<i64: 16, 4>}, {pipeline_mode = #tpu.pipeline_mode<synchronous>, transform_indices = @transform_1, window_bounds = array<i64: 2, 256>}, {pipeline_mode = #tpu.pipeline_mode<synchronous>, transform_indices = @transform_2, window_bounds = array<i64: 256, 256>}, {transform_indices = @transform_3, window_bounds = array<i64: 16, 256>}]} {
    %c0 = arith.constant 0 : index
    %c0_0 = arith.constant 0 : index
    %0 = vector.load %arg1[%c0, %c0_0] : memref<16x4xi32, #tpu.memory_space<vmem>>, vector<16x4xi32>
    %c0_1 = arith.constant 0 : index
    %c0_2 = arith.constant 0 : index
    %1 = vector.load %arg3[%c0_1, %c0_2] : memref<256x256xf32, #tpu.memory_space<vmem>>, vector<256x256xf32>
    %c0_3 = arith.constant 0 : index
    %c0_4 = arith.constant 0 : index
    %2 = vector.load %arg2[%c0_3, %c0_4] : memref<2x256xi32, #tpu.memory_space<vmem>>, vector<1x256xi32>
    %c1 = arith.constant 1 : index
    %c0_5 = arith.constant 0 : index
    %3 = vector.load %arg2[%c1, %c0_5] : memref<2x256xi32, #tpu.memory_space<vmem>>, vector<1x256xi32>
    %4 = vector.extract_strided_slice %0 {offsets = [0, 3], sizes = [16, 1], strides = [1, 1]} : vector<16x4xi32> to vector<16x1xi32>
    %5 = vector.shape_cast %4 : vector<16x1xi32> to vector<16xi32>
    %6 = vector.shape_cast %5 : vector<16xi32> to vector<16x1xi32>
    %c2_i32 = arith.constant 2 : i32
    %7 = vector.broadcast %c2_i32 : i32 to vector<1x256xi32>
    %8 = arith.cmpi eq, %2, %7 : vector<1x256xi32>
    %9 = vector.extract_strided_slice %0 {offsets = [0, 2], sizes = [16, 1], strides = [1, 1]} : vector<16x4xi32> to vector<16x1xi32>
    %10 = vector.shape_cast %9 : vector<16x1xi32> to vector<16xi32>
    %11 = vector.shape_cast %10 : vector<16xi32> to vector<16x1xi32>
    %12 = vector.shape_cast %8 : vector<1x256xi1> to vector<1x256xi1>
    %13 = vector.broadcast %12 : vector<1x256xi1> to vector<16x256xi1>
    %14 = vector.shape_cast %11 : vector<16x1xi32> to vector<16x1xi32>
    %15 = vector.broadcast %14 : vector<16x1xi32> to vector<16x256xi32>
    %16 = vector.shape_cast %6 : vector<16x1xi32> to vector<16x1xi32>
    %17 = vector.broadcast %16 : vector<16x1xi32> to vector<16x256xi32>
    %18 = arith.select %13, %15, %17 : vector<16x256xi1>, vector<16x256xi32>
    %c1_i32 = arith.constant 1 : i32
    %19 = vector.broadcast %c1_i32 : i32 to vector<1x256xi32>
    %20 = arith.cmpi eq, %2, %19 : vector<1x256xi32>
    %21 = vector.extract_strided_slice %0 {offsets = [0, 1], sizes = [16, 1], strides = [1, 1]} : vector<16x4xi32> to vector<16x1xi32>
    %22 = vector.shape_cast %21 : vector<16x1xi32> to vector<16xi32>
    %23 = vector.shape_cast %22 : vector<16xi32> to vector<16x1xi32>
    %24 = vector.shape_cast %20 : vector<1x256xi1> to vector<1x256xi1>
    %25 = vector.broadcast %24 : vector<1x256xi1> to vector<16x256xi1>
    %26 = vector.shape_cast %23 : vector<16x1xi32> to vector<16x1xi32>
    %27 = vector.broadcast %26 : vector<16x1xi32> to vector<16x256xi32>
    %28 = arith.select %25, %27, %18 : vector<16x256xi1>, vector<16x256xi32>
    %c0_i32 = arith.constant 0 : i32
    %29 = vector.broadcast %c0_i32 : i32 to vector<1x256xi32>
    %30 = arith.cmpi eq, %2, %29 : vector<1x256xi32>
    %31 = vector.extract_strided_slice %0 {offsets = [0, 0], sizes = [16, 1], strides = [1, 1]} : vector<16x4xi32> to vector<16x1xi32>
    %32 = vector.shape_cast %31 : vector<16x1xi32> to vector<16xi32>
    %33 = vector.shape_cast %32 : vector<16xi32> to vector<16x1xi32>
    %34 = vector.shape_cast %30 : vector<1x256xi1> to vector<1x256xi1>
    %35 = vector.broadcast %34 : vector<1x256xi1> to vector<16x256xi1>
    %36 = vector.shape_cast %33 : vector<16x1xi32> to vector<16x1xi32>
    %37 = vector.broadcast %36 : vector<16x1xi32> to vector<16x256xi32>
    %38 = arith.select %35, %37, %28 : vector<16x256xi1>, vector<16x256xi32>
    %39 = vector.broadcast %3 : vector<1x256xi32> to vector<16x256xi32>
    %40 = arith.cmpi eq, %38, %39 : vector<16x256xi32>
    %41 = arith.extui %40 : vector<16x256xi1> to vector<16x256xi32>
    %42 = arith.sitofp %41 : vector<16x256xi32> to vector<16x256xf32>
    %cst = arith.constant dense<0.000000e+00> : vector<16x256xf32>
    %43 = tpu.matmul %42, %1, %cst {dimension_numbers = #tpu.dot_dimension_numbers<[1], [0], [0], [1], [0, 0, 1, 1], [], []>, precision = #tpu.contract_precision<fp32>} : vector<16x256xf32>, vector<256x256xf32>, vector<16x256xf32> -> vector<16x256xf32>
    %c0_6 = arith.constant 0 : index
    %c0_7 = arith.constant 0 : index
    %44 = vector.load %arg4[%c0_6, %c0_7] : memref<16x256xf32, #tpu.memory_space<vmem>>, vector<16x256xf32>
    tpu.vector_store %arg4[%c0_6, %c0_7], %43 {strides = array<i32>} : memref<16x256xf32, #tpu.memory_space<vmem>>, vector<16x256xf32>,
    return
  }
  func.func @transform_0(%arg0: i32) -> (i32, i32) {
    %c0_i32 = arith.constant 0 : i32
    %c0_i32_0 = arith.constant 0 : i32
    return %arg0, %c0_i32 : i32, i32
  }
  func.func @transform_1(%arg0: i32) -> (i32, i32) {
    %c0_i32 = arith.constant 0 : i32
    %c0_i32_0 = arith.constant 0 : i32
    %c0_i32_1 = arith.constant 0 : i32
    return %c0_i32, %c0_i32_0 : i32, i32
  }
  func.func @transform_2(%arg0: i32) -> (i32, i32) {
    %c0_i32 = arith.constant 0 : i32
    %c0_i32_0 = arith.constant 0 : i32
    %c0_i32_1 = arith.constant 0 : i32
    return %c0_i32, %c0_i32_0 : i32, i32
  }
  func.func @transform_3(%arg0: i32) -> (i32, i32) {
    %c0_i32 = arith.constant 0 : i32
    %c0_i32_0 = arith.constant 0 : i32
    return %arg0, %c0_i32 : i32, i32
  }
}

</mosaic_0001>

<bundles_post_ra>
// kernel: tpu_custom_call.1
= control target key start
LH: loop header
LB: loop body
LE: loop exit
PB: predicated region body
PF: predicated region fallthrough
CT: control target
= control target key end

     0   :  { %8 = vsyncpa [#allocation3], 0  ;;  %s3306_s0 = inlined_call_operand.vmem [shape: s32[22,4], index: 0, kind: input, shape index: {}]   ;;  %s3307_s1 = inlined_call_operand.vmem [shape: s32[2,256], index: 1, kind: input, shape index: {}]   ;;  %s3308_s2 = inlined_call_operand.hbm [shape: f32[256,256], index: 2, kind: input, shape index: {}]   ;;  %s3309_s3 = inlined_call_operand.hbm [shape: f32[22,256], index: 3, kind: output, shape index: {}]  }
   0x1   :  { %9 = vsyncpa [#allocation4], 0 }
   0x2   :  { %11 = vsyncpa [#allocation4 + $0x1], 0  ;;  %s2049_s12 = smov 0   ;;  %s2051_s13 = smov 0  }
   0x3   :  { %s2053_s14 = smov 0   ;;  %s2055_s15 = smov 0  }
   0x4 LB: > { %s2070_s16 = sadd.s32 4294967295, %s2015_s15   ;;  %s1819_s17 = sadd.s32 4294967294, %s2015_s15   ;;  %s2015_s15 = sphi %s2055_s15, %s3921_s15   ;;  %s2011_s14 = sphi %s2053_s14, %s3920_s14   ;;  %s2007_s13 = sphi %s2051_s13, %s3919_s13   ;;  %s2003_s12 = sphi %s2049_s12, %s3918_s12  }
   0x5   : > { %s2074_s18 = sadd.s32 1, %s2015_s15   ;;  %s92_s19 = sadd.s32 1, %s2011_s14 }
   0x6   : > { %s89_s20 = ssub.s32 %s2015_s15, %s2074_s18  ;;  %p102_p0 = scmp.ne.s32.totalorder %s2011_s14, %s2007_s13 }
   0x7   : > { %p90_p1 = scmp.eq.s32.totalorder %s89_s20, 0  ;;  %p103_p2 = scmp.eq.s32.totalorder %s2070_s16, 1 }
   0x8   : > { %p108_p3 = scmp.ne.s32.totalorder %s2007_s13, %s2003_s12  ;;  %p109_p4 = scmp.eq.s32.totalorder %s1819_s17, 1 }
   0x9   : > { %s2085_s21 = scalar_select %p90_p1, %s2011_s14, %s92_s19  }
   0xa   : > { %p2087_p5 = por %p103_p2, %p102_p0  ;;  %p2091_p6 = por %p109_p4, %p108_p3 }
   0xb   : > { %p1820_p7 = scmp.ge.s32.totalorder %s2015_s15, 1  ;;  %p116_p8 = scmp.lt.s32.totalorder %s2015_s15, 3 }
   0xc   : > { %s3540_s23 = scalar_select %p2091_p6, 1, 0 }
   0xd   : > { %p1872_p9 = scmp.eq.s32.totalorder %s2070_s16, 0  ;;  %p2098_p10 = pnand %p1820_p7, %p116_p8 }
   0xe   : > { %s2017_s25 = smov [#allocation2]  }
   0xf   : > { %s131_s26 = sshll.u32 %s2017_s25, 4  ;;  %p1864_p11 = pneg %p2098_p10  ;;  %s132_s26 = int_to_ptr.vmem [resolvable:$true] %s131_s26 }
  0x10   : > { %s1936_s27 = scalar_lea.vmem %s132_s26, 8192  ;;  %p1944_p3 = scmp.lt.s32.totalorder %s132_s26, %s132_s26 }
  0x11   : > { %p1865_p12 = pnand %p1872_p9, %p1864_p11  ;;  %p1937_p0 = scmp.ne.s32.totalorder %s132_s26, %s1936_s27 }
  0x12   : > { %p1945_p4 = scmp.lt.s32.totalorder %s1936_s27, %s1936_s27 }
  0x13   : > { %p1927_p13 = pneg %p1865_p12 }
  0x14   : > { %p1946_p6 = por %p1945_p4, %p1944_p3 }
  0x15   : > { %p1939_p1 = pnand %p1937_p0, %p1927_p13 }
  0x17   : > { %p1940_p2 = pneg %p1939_p1 }
  0x19   : > { %p1947_p7 = pnand %p1946_p6, %p1940_p2 }
  0x1b   : > { %1950 = shalt.err (!%p1947_p7)
}
  0x1c   : > { %s2018_s28 = smov 256   ;;  %s2019_s29 = smov 16  }
  0x1d   : > { %1867 = dma.hbm_to_vmem [thread:$0]  (!%p1865_p12), %s3308_s2, 8192, %s132_s26, [#allocation3], %s2018_s28, %s2018_s28, %s2019_s29  }
  0x1e   : > { %164 = sbr.rel (%p2098_p10) target bundleno = 553 (0x229), region = 32 }
  0x23   : > { %1994 = dma.done.wait (%p1872_p9), [#allocation3], 8192  }
  0x24   : > { %1996 = vsyncadd (%p1872_p9), [#allocation3], 4294959104  ;;  %s2116_s5 = sshll.u32 %s2070_s16, 1  ;;  %v2020_v0 = vmov 1   ;;  %v2021_v1 = vmov 2   ;;  %v245_v3 = vld [vmem:[#allocation2 + $0xf8] sm:$0xff] }
  0x25   : > { %1920 = vset.pattern.permute.xlu1 %v2020_v0  ;;  %1918 = vset.pattern.permute.xlu0 %v2021_v1  ;;  %p197_p6 = scmp.lt.s32.totalorder %s2116_s5, 2  ;;  %v2128_v4 = vand.u32 4294901760, %v245_v3  ;;  %v244_v5 = vld [vmem:[#allocation2 + $0xf0] sm:$0xff]  ;;  %v243_v6 = vld [vmem:[#allocation2 + $0xe8] sm:$0xff]  ;;  %v242_v7 = vld [vmem:[#allocation2 + $0xe0] sm:$0xff]  ;;  %v3330_v23 = vmov 0  }
  0x26   : > { %v2130_v8 = vand.u32 4294901760, %v244_v5  ;;  %v2132_v9 = vand.u32 4294901760, %v243_v6  ;;  %v2134_v10 = vand.u32 4294901760, %v242_v7  ;;  %v241_v11 = vld [vmem:[#allocation2 + $0xd8] sm:$0xff]  ;;  %v240_v12 = vld [vmem:[#allocation2 + $0xd0] sm:$0xff]  ;;  %v239_v13 = vld [vmem:[#allocation2 + $0xc8] sm:$0xff] }
  0x27   : > { %s198_s6 = scalar_select %p197_p6, %s2116_s5, 2  ;;  %3542 = vst [vmem:[#allocation8_spill] sm:$0xff] %v2128_v4  ;;  %v2137_v14 = vsub.f32 %v245_v3, %v2128_v4  ;;  %v2139_v15 = vand.u32 4294901760, %v241_v11  ;;  %v2141_v16 = vand.u32 4294901760, %v240_v12  ;;  %v2143_v17 = vand.u32 4294901760, %v239_v13  ;;  %v238_v18 = vld [vmem:[#allocation2 + $0xc0] sm:$0xff]  ;;  %374 = vmatprep.subr.mxu0 %v2128_v4 }
  0x28   : > { %3543 = vst [vmem:[#allocation9_spill] sm:$0xff] %v2130_v8  ;;  %3544 = vst [vmem:[#allocation10_spill] sm:$0xff] %v2132_v9  ;;  %v2147_v19 = vsub.f32 %v244_v5, %v2130_v8  ;;  %v2150_v20 = vsub.f32 %v243_v6, %v2132_v9  ;;  %v2153_v21 = vsub.f32 %v242_v7, %v2134_v10  ;;  %v2155_v22 = vand.u32 4294901760, %v238_v18  ;;  %v237_v42 = vld [vmem:[#allocation2 + $0xb8] sm:$0xff]  ;;  %v236_v47 = vld [vmem:[#allocation2 + $0xb0] sm:$0xff]  ;;  %s189_s24 = sand.u32 1, %s2007_s13  }
  0x29   : > { %s1827_s7 = sshll.u32 %s198_s6, 3  ;;  %3545 = vst [vmem:[#allocation11_spill] sm:$0xff] %v2134_v10  ;;  %3546 = vst [vmem:[#allocation12_spill] sm:$0xff] %v2137_v14  ;;  %376 = vmatpush1.msra.mxu0 %v2130_v8  ;;  %v2023_v24 = vmov 3   ;;  %v3328_v25 = vand.u32 4294901760, %v2137_v14  ;;  %v2161_v26 = vsub.f32 %v241_v11, %v2139_v15  ;;  %v2164_v27 = vsub.f32 %v240_v12, %v2141_v16  ;;  %v235_v48 = vld [vmem:[#allocation2 + $0xa8] sm:$0xff] }
  0x2a   : > { %s2125_s10 = scalar_lea.vmem %s3306_s0, %s1827_s7  ;;  %v2167_v28 = vsub.f32 %v239_v13, %v2143_v17  ;;  %v3325_v29 = vand.u32 4294901760, %v2147_v19  ;;  %v3324_v30 = vand.u32 4294901760, %v2150_v20  ;;  %v3323_v31 = vand.u32 4294901760, %v2153_v21  ;;  %378 = vmatprep.subr.mxu0 %v2132_v9  ;;  %v234_v49 = vld [vmem:[#allocation2 + $0xa0] sm:$0xff]  ;;  %v233_v54 = vld [vmem:[#allocation2 + $0x98] sm:$0xff]  ;;  %v232_v55 = vld [vmem:[#allocation2 + $0x90] sm:$0xff] }
  0x2b   : > { %v212_v2 = vld [vmem:[%s2125_s10] sm:$0xff]  ;;  %v2173_v32 = vsub.f32 %v238_v18, %v2155_v22  ;;  %v213_v33 = vld [vmem:[%s2125_s10 + $0x8] sm:$0xff]  ;;  %v537_v34 = vsub.f32 %v2137_v14, %v3328_v25  ;;  %v3321_v35 = vand.u32 4294901760, %v2161_v26  ;;  %v3320_v36 = vand.u32 4294901760, %v2164_v27  ;;  %380 = vmatpush1.msra.mxu0 %v2134_v10  ;;  %v220_v25 = vld [vmem:[#allocation2 + $0x30] sm:$0xff]  ;;  %s1825_s25 = sshll.u32 %s189_s24, 5 }
  0x2c   : > { %322 = vperm.xlu1 %1920, %v212_v2   ;;  %294 = vperm.xlu0 %1918, %v212_v2   ;;  %v3319_v37 = vand.u32 4294901760, %v2167_v28  ;;  %v543_v38 = vsub.f32 %v2147_v19, %v3325_v29  ;;  %v549_v39 = vsub.f32 %v2150_v20, %v3324_v30  ;;  %v555_v40 = vsub.f32 %v2153_v21, %v3323_v31  ;;  %v231_v56 = vld [vmem:[#allocation2 + $0x88] sm:$0xff]  ;;  %v230_v61 = vld [vmem:[#allocation2 + $0x80] sm:$0xff]  ;;  %v221_v30 = vld [vmem:[#allocation2 + $0x38] sm:$0xff]  ;;  %s191_s26 = scalar_lea.vmem [#allocation5], %s1825_s25  ;;  %s3247_s27 = scalar_lea.sflag [#allocation4], %s189_s24 }
  0x2d   : > { %v3317_v41 = vand.u32 4294901760, %v2173_v32  ;;  %v538_v43 = vand.u32 4294901760, %v537_v34  ;;  %v561_v44 = vsub.f32 %v2161_v26, %v3321_v35  ;;  %v567_v45 = vsub.f32 %v2164_v27, %v3320_v36  ;;  %382 = vmatprep.subr.mxu0 %v2139_v15  ;;  %s1732_s28 = ssub.s32 (%p2087_p5), 3, %s2116_s5 }
  0x2e   : > { %v573_v46 = vsub.f32 %v2167_v28, %v3319_v37  ;;  %v544_v50 = vand.u32 4294901760, %v543_v38  ;;  %v550_v51 = vand.u32 4294901760, %v549_v39  ;;  %v556_v52 = vand.u32 4294901760, %v555_v40  ;;  %384 = vmatpush1.msra.mxu0 %v2141_v16  ;;  %p1733_p8 = scmp.lt.s32.totalorder (%p2087_p5), %s1732_s28, 2 }
  0x2f   : > { %v579_v53 = vsub.f32 %v2173_v32, %v3317_v41  ;;  %539 = vmatprep.subr.mxu1 %v538_v43  ;;  %v562_v57 = vand.u32 4294901760, %v561_v44  ;;  %v568_v58 = vand.u32 4294901760, %v567_v45  ;;  %v2208_v60 = vand.u32 4294901760, %v237_v42  ;;  %386 = vmatprep.subr.mxu0 %v2143_v17 }
  0x30   : > { %1921 = vset.pattern.permute.xlu1 %v3330_v23  ;;  %1919 = vset.pattern.permute.xlu0 %v2023_v24  ;;  %v574_v59 = vand.u32 4294901760, %v573_v46  ;;  %v2210_v63 = vand.u32 4294901760, %v236_v47  ;;  %v2220_v5 = vand.u32 4294901760, %v233_v54  ;;  %v2222_v6 = vand.u32 4294901760, %v232_v55 }
  0x31   : > { %344 = vperm.xlu1 %1921, %v212_v2   ;;  %300 = vperm.xlu0 %1919, %v212_v2   ;;  %v580_v62 = vand.u32 4294901760, %v579_v53  ;;  %v2214_v2 = vand.u32 4294901760, %v234_v49  ;;  %v2218_v3 = vsub.f32 %v237_v42, %v2208_v60  ;;  %v2224_v7 = vand.u32 4294901760, %v231_v56 }
  0x32   : > { %545 = vmatpush1.msra.mxu1 %v544_v50  ;;  %v2229_v11 = vsub.f32 %v236_v47, %v2210_v63  ;;  %v2237_v18 = vand.u32 4294901760, %v230_v61  ;;  %v2242_v34 = vsub.f32 %v233_v54, %v2220_v5  ;;  %v2245_v38 = vsub.f32 %v232_v55, %v2222_v6  ;;  %388 = vmatpush1.msra.mxu0 %v2155_v22 }
  0x33   : > { %551 = vmatprep.subr.mxu1 %v550_v51  ;;  %v2235_v13 = vsub.f32 %v234_v49, %v2214_v2  ;;  %v3316_v24 = vand.u32 4294901760, %v2218_v3  ;;  %v2248_v39 = vsub.f32 %v231_v56, %v2224_v7  ;;  %v229_v51 = vld [vmem:[#allocation2 + $0x78] sm:$0xff]  ;;  %390 = vmatprep.subr.mxu0 %v2208_v60  ;;  %v228_v56 = vld [vmem:[#allocation2 + $0x70] sm:$0xff] }
  0x34   : > { %557 = vmatpush1.msra.mxu1 %v556_v52  ;;  %v3315_v40 = vand.u32 4294901760, %v2229_v11  ;;  %v2254_v43 = vsub.f32 %v230_v61, %v2237_v18  ;;  %v3310_v45 = vand.u32 4294901760, %v2242_v34  ;;  %v3311_v46 = vand.u32 4294901760, %v2245_v38  ;;  %392 = vmatpush1.msra.mxu0 %v2210_v63 }
  0x35   : > { %1922 = vset.pattern.permute.xlu1 %v2021_v1  ;;  %303 = vperm.xlu0 %1919, %v213_v33   ;;  %v2212_v1 = vand.u32 4294901760, %v235_v48  ;;  %3547 = vst [vmem:[#allocation13_spill] sm:$0xff] %v2248_v39  ;;  %v585_v44 = vsub.f32 %v2218_v3, %v3316_v24  ;;  %v2288_v24 = vand.u32 4294901760, %v229_v51 }
  0x36   : > { %297 = vperm.xlu1 %1922, %v213_v33   ;;  %563 = vmatprep.subr.mxu1 %v562_v57  ;;  %3548 = vst [vmem:[#allocation14_spill] sm:$0xff] %v2254_v43  ;;  %v591_v47 = vsub.f32 %v2229_v11, %v3315_v40  ;;  %v3318_v50 = vand.u32 4294901760, %v2254_v43  ;;  %v609_v53 = vsub.f32 %v2242_v34, %v3310_v45  ;;  %v227_v57 = vld [vmem:[#allocation2 + $0x68] sm:$0xff]  ;;  %v225_v45 = vld [vmem:[#allocation2 + $0x58] sm:$0xff] }
  0x37   : > { %v2232_v12 = vsub.f32 %v235_v48, %v2212_v1  ;;  %569 = vmatpush1.msra.mxu1 %v568_v58  ;;  %v586_v52 = vand.u32 4294901760, %v585_v44  ;;  %v615_v54 = vsub.f32 %v2245_v38, %v3311_v46  ;;  %v226_v58 = vld [vmem:[#allocation2 + $0x60] sm:$0xff]  ;;  %394 = vmatprep.subr.mxu0 %v2212_v1  ;;  %v224_v46 = vld [vmem:[#allocation2 + $0x50] sm:$0xff]  ;;  %v2293_v41 = vand.u32 4294901760, %v227_v57 }
  0x38   : > { %575 = vmatprep.subr.mxu1 %v574_v59  ;;  %v592_v59 = vand.u32 4294901760, %v591_v47  ;;  %v627_v44 = vsub.f32 %v2254_v43, %v3318_v50  ;;  %396 = vmatpush1.msra.mxu0 %v2214_v2  ;;  %v222_v47 = vld [vmem:[#allocation2 + $0x40] sm:$0xff]  ;;  %v2295_v50 = vand.u32 4294901760, %v226_v58 }
  0x39   : > { %1924 = vset.pattern.permute.xlu0 %v3330_v23  ;;  %v3313_v42 = vand.u32 4294901760, %v2232_v12  ;;  %581 = vmatpush1.msra.mxu1 %v580_v62  ;;  %v218_v23 = vld [vmem:[#allocation2 + $0x20] sm:$0xff] }
  0x3a   : > { %1923 = vset.pattern.permute.xlu1 %v2020_v0  ;;  %347 = vperm.xlu0 %1924, %v213_v33   ;;  %v3312_v0 = vand.u32 4294901760, %v2235_v13 }
  0x3b   : > { %325 = vperm.xlu1 %1923, %v213_v33   ;;  %v3314_v33 = vand.u32 4294901760, %v2248_v39  ;;  %v597_v48 = vsub.f32 %v2232_v12, %v3313_v42  ;;  %587 = vmatprep.subr.mxu1 %v586_v52  ;;  %v610_v42 = vand.u32 4294901760, %v609_v53  ;;  %v2299_v52 = vsub.f32 %v229_v51, %v2288_v24 }
  0x3c   : > { %v603_v49 = vsub.f32 %v2235_v13, %v3312_v0  ;;  %v223_v0 = vld [vmem:[#allocation2 + $0x48] sm:$0xff]  ;;  %593 = vmatpush1.msra.mxu1 %v592_v59  ;;  %398 = vmatprep.subr.mxu0 %v2220_v5  ;;  %v2301_v53 = vand.u32 4294901760, %v225_v45  ;;  %v2318_v51 = vand.u32 4294901760, %v222_v47 }
  0x3d   : > { %v621_v55 = vsub.f32 %v2248_v39, %v3314_v33  ;;  %v598_v61 = vand.u32 4294901760, %v597_v48  ;;  %v616_v33 = vand.u32 4294901760, %v615_v54  ;;  %v628_v48 = vand.u32 4294901760, %v627_v44  ;;  %3549 = vst [vmem:[#allocation15_spill] sm:$0xff] %v2299_v52  ;;  %400 = vmatpush1.msra.mxu0 %v2222_v6 }
  0x3e   : > { %v604_v62 = vand.u32 4294901760, %v603_v49  ;;  %v2291_v49 = vand.u32 4294901760, %v228_v56  ;;  %v2303_v54 = vand.u32 4294901760, %v224_v46  ;;  %v2312_v44 = vsub.f32 %v227_v57, %v2293_v41  ;;  %402 = vmatprep.subr.mxu0 %v2224_v7  ;;  %3554 = vst [vmem:[#allocation20_spill] sm:$0xff] %v2318_v51 }
  0x3f   : > { %v622_v40 = vand.u32 4294901760, %v621_v55  ;;  %599 = vmatprep.subr.mxu1 %v598_v61  ;;  %v2306_v55 = vand.u32 4294901760, %v223_v0  ;;  %v2315_v61 = vsub.f32 %v226_v58, %v2295_v50  ;;  %v3322_v37 = vand.u32 4294901760, %v2299_v52  ;;  %404 = vmatpush1.msra.mxu0 %v2237_v18 }
  0x40   : > { %605 = vmatpush1.msra.mxu1 %v604_v62  ;;  %v2309_v59 = vsub.f32 %v228_v56, %v2291_v49  ;;  %3552 = vst [vmem:[#allocation18_spill] sm:$0xff] %v2312_v44  ;;  %v2322_v36 = vsub.f32 %v225_v45, %v2301_v53  ;;  %v2325_v62 = vsub.f32 %v224_v46, %v2303_v54  ;;  %v3327_v58 = vand.u32 4294901760, %v2312_v44 }
  0x41   : > { %3550 = vst [vmem:[#allocation16_spill] sm:$0xff] %v2306_v55  ;;  %3553 = vst [vmem:[#allocation19_spill] sm:$0xff] %v2315_v61  ;;  %611 = vmatprep.subr.mxu1 %v610_v42  ;;  %v2328_v56 = vsub.f32 %v223_v0, %v2306_v55  ;;  %v3329_v42 = vand.u32 4294901760, %v2315_v61  ;;  %v2335_v35 = vsub.f32 %v222_v47, %v2318_v51  ;;  %406 = vmatprep.subr.mxu0 %v2288_v24 }
  0x42   : > { %3551 = vst [vmem:[#allocation17_spill] sm:$0xff] %v2309_v59  ;;  %3555 = vst [vmem:[#allocation21_spill] sm:$0xff] %v2322_v36  ;;  %617 = vmatpush1.msra.mxu1 %v616_v33  ;;  %v3326_v57 = vand.u32 4294901760, %v2309_v59  ;;  %v633_v0 = vsub.f32 %v2299_v52, %v3322_v37  ;;  %v3336_v45 = vand.u32 4294901760, %v2322_v36  ;;  %v3339_v46 = vand.u32 4294901760, %v2325_v62  ;;  %408 = vmatpush1.msra.mxu0 %v2291_v49 }
  0x43   : > { %3556 = vst [vmem:[#allocation22_spill] sm:$0xff] %v2325_v62  ;;  %3557 = vst [vmem:[#allocation23_spill] sm:$0xff] %v2328_v56  ;;  %623 = vmatprep.subr.mxu1 %v622_v40  ;;  %v3344_v33 = vand.u32 4294901760, %v2328_v56  ;;  %v645_v40 = vsub.f32 %v2312_v44, %v3327_v58  ;;  %v651_v37 = vsub.f32 %v2315_v61, %v3329_v42  ;;  %410 = vmatprep.subr.mxu0 %v2293_v41  ;;  %v219_v42 = vld [vmem:[#allocation2 + $0x28] sm:$0xff] }
  0x44   : > { %3558 = vst [vmem:[#allocation24_spill] sm:$0xff] %v2335_v35  ;;  %629 = vmatpush1.msra.mxu1 %v628_v48  ;;  %v639_v47 = vsub.f32 %v2309_v59, %v3326_v57  ;;  %v634_v29 = vand.u32 4294901760, %v633_v0  ;;  %v657_v48 = vsub.f32 %v2322_v36, %v3336_v45  ;;  %v663_v57 = vsub.f32 %v2325_v62, %v3339_v46  ;;  %v217_v36 = vld [vmem:[#allocation2 + $0x18] sm:$0xff]  ;;  %v216_v46 = vld [vmem:[#allocation2 + $0x10] sm:$0xff]  ;;  %v215_v62 = vld [vmem:[#allocation2 + $0x8] sm:$0xff] }
  0x45   : > { %v669_v58 = vsub.f32 %v2328_v56, %v3344_v33  ;;  %412 = vmatpush1.msra.mxu0 %v2295_v50  ;;  %v646_v61 = vand.u32 4294901760, %v645_v40  ;;  %v652_v0 = vand.u32 4294901760, %v651_v37  ;;  %v3559_v44 = vand.u32 4294901760, %v2335_v35 }
  0x46   : > { %v640_v31 = vand.u32 4294901760, %v639_v47  ;;  %414 = vmatprep.subr.mxu0 %v2301_v53  ;;  %635 = vmatprep.subr.mxu1 %v634_v29  ;;  %v658_v59 = vand.u32 4294901760, %v657_v48  ;;  %v664_v33 = vand.u32 4294901760, %v663_v57  ;;  %v2370_v52 = vand.u32 4294901760, %v221_v30  ;;  %v214_v47 = vld [vmem:[#allocation2] sm:$0xff] }
  0x47   : > { %v675_v45 = vsub.f32 %v2335_v35, %v3559_v44  ;;  %v670_v56 = vand.u32 4294901760, %v669_v58  ;;  %416 = vmatpush1.msra.mxu0 %v2303_v54  ;;  %v2373_v40 = vand.u32 4294901760, %v220_v25  ;;  %v2375_v43 = vand.u32 4294901760, %v219_v42 }
  0x48   : > { %3560 = vst [vmem:[#allocation25_spill] sm:$0xff] %v2370_v52  ;;  %641 = vmatpush1.msra.mxu1 %v640_v31  ;;  %v2377_v44 = vand.u32 4294901760, %v218_v23  ;;  %418 = vmatprep.subr.mxu0 %v2306_v55  ;;  %v2381_v29 = vsub.f32 %v221_v30, %v2370_v52  ;;  %v2383_v57 = vand.u32 4294901760, %v217_v36  ;;  %v2385_v58 = vand.u32 4294901760, %v216_v46  ;;  %v270_v55 = vld [vmem:[#allocation2 + $0x1c0] sm:$0xff] }
  0x49   : > { %v676_v37 = vand.u32 4294901760, %v675_v45  ;;  %3561 = vst [vmem:[#allocation26_spill] sm:$0xff] %v2373_v40  ;;  %3562 = vst [vmem:[#allocation27_spill] sm:$0xff] %v2375_v43  ;;  %647 = vmatprep.subr.mxu1 %v646_v61  ;;  %v2387_v48 = vand.u32 4294901760, %v215_v62  ;;  %420 = vmatpush1.msra.mxu0 %v2318_v51  ;;  %v2391_v31 = vsub.f32 %v220_v25, %v2373_v40  ;;  %v2399_v30 = vand.u32 4294901760, %v214_v47  ;;  %v271_v51 = vld [vmem:[#allocation2 + $0x1c8] sm:$0xff] }
  0x4a   : > { %3563 = vst [vmem:[#allocation28_spill] sm:$0xff] %v2377_v44  ;;  %3564 = vst [vmem:[#allocation29_spill] sm:$0xff] %v2381_v29  ;;  %653 = vmatpush1.msra.mxu1 %v652_v0  ;;  %v2394_v45 = vsub.f32 %v219_v42, %v2375_v43  ;;  %v2397_v61 = vsub.f32 %v218_v23, %v2377_v44  ;;  %422 = vmatprep.subr.mxu0 %v2370_v52  ;;  %v272_v52 = vld [vmem:[#allocation2 + $0x1d0] sm:$0xff] }
  0x4b   : > { %3565 = vst [vmem:[#allocation30_spill] sm:$0xff] %v2383_v57  ;;  %3566 = vst [vmem:[#allocation31_spill] sm:$0xff] %v2385_v58  ;;  %659 = vmatprep.subr.mxu1 %v658_v59  ;;  %v2404_v39 = vsub.f32 %v217_v36, %v2383_v57  ;;  %v2407_v0 = vsub.f32 %v216_v46, %v2385_v58  ;;  %v2410_v25 = vsub.f32 %v215_v62, %v2387_v48 }
  0x4c   : > { %3567 = vst [vmem:[#allocation32_spill] sm:$0xff] %v2387_v48  ;;  %3568 = vst [vmem:[#allocation33_spill] sm:$0xff] %v2391_v31  ;;  %424 = vmatpush1.msra.mxu0 %v2373_v40  ;;  %665 = vmatpush1.msra.mxu1 %v664_v33  ;;  %v3361_v42 = vand.u32 4294901760, %v2394_v45  ;;  %v2417_v35 = vsub.f32 %v214_v47, %v2399_v30  ;;  %v3576_v36 = vand.u32 4294901760, %v2381_v29  ;;  %v3577_v59 = vand.u32 4294901760, %v2391_v31  ;;  %v277_v33 = vld [vmem:[#allocation2 + $0x1f8] sm:$0xff] }
  0x4d   : > { %3569 = vst [vmem:[#allocation34_spill] sm:$0xff] %v2394_v45  ;;  %3570 = vst [vmem:[#allocation35_spill] sm:$0xff] %v2397_v61  ;;  %426 = vmatprep.subr.mxu0 %v2375_v43  ;;  %671 = vmatprep.subr.mxu1 %v670_v56  ;;  %v3578_v43 = vand.u32 4294901760, %v2397_v61 }
  0x4e   : > { %3571 = vst [vmem:[#allocation36_spill] sm:$0xff] %v2399_v30  ;;  %3572 = vst [vmem:[#allocation37_spill] sm:$0xff] %v2404_v39  ;;  %v681_v62 = vsub.f32 %v2381_v29, %v3576_v36  ;;  %428 = vmatpush1.msra.mxu0 %v2377_v44  ;;  %677 = vmatpush1.msra.mxu1 %v676_v37  ;;  %v687_v47 = vsub.f32 %v2391_v31, %v3577_v59  ;;  %v3579_v37 = vand.u32 4294901760, %v2404_v39  ;;  %v276_v44 = vld [vmem:[#allocation2 + $0x1f0] sm:$0xff] }
  0x4f   : > { %3573 = vst [vmem:[#allocation38_spill] sm:$0xff] %v2407_v0  ;;  %3574 = vst [vmem:[#allocation39_spill] sm:$0xff] %v2410_v25  ;;  %v693_v56 = vsub.f32 %v2394_v45, %v3361_v42  ;;  %v699_v36 = vsub.f32 %v2397_v61, %v3578_v43  ;;  %430 = vmatprep.subr.mxu0 %v2383_v57  ;;  %v3580_v59 = vand.u32 4294901760, %v2407_v0  ;;  %v3581_v42 = vand.u32 4294901760, %v2410_v25  ;;  %v275_v43 = vld [vmem:[#allocation2 + $0x1e8] sm:$0xff]  ;;  %v274_v61 = vld [vmem:[#allocation2 + $0x1e0] sm:$0xff] }
  0x50   : > { %3575 = vst [vmem:[#allocation40_spill] sm:$0xff] %v2417_v35  ;;  %v682_v23 = vand.u32 4294901760, %v681_v62  ;;  %v705_v29 = vsub.f32 %v2404_v39, %v3579_v37  ;;  %432 = vmatpush1.msra.mxu0 %v2385_v58  ;;  %v688_v46 = vand.u32 4294901760, %v687_v47  ;;  %v3582_v40 = vand.u32 4294901760, %v2417_v35  ;;  %v273_v39 = vld [vmem:[#allocation2 + $0x1d8] sm:$0xff] }
  0x51   : > { %v711_v31 = vsub.f32 %v2407_v0, %v3580_v59  ;;  %v717_v45 = vsub.f32 %v2410_v25, %v3581_v42  ;;  %v694_v57 = vand.u32 4294901760, %v693_v56  ;;  %v700_v62 = vand.u32 4294901760, %v699_v36  ;;  %434 = vmatprep.subr.mxu0 %v2387_v48  ;;  %v262_v48 = vld [vmem:[#allocation2 + $0x180] sm:$0xff] }
  0x52   : > { %v723_v37 = vsub.f32 %v2417_v35, %v3582_v40  ;;  %683 = vmatprep.subr.mxu1 %v682_v23  ;;  %v706_v59 = vand.u32 4294901760, %v705_v29  ;;  %v2452_v0 = vand.u32 4294901760, %v277_v33  ;;  %436 = vmatpush1.msra.mxu0 %v2399_v30  ;;  %v2455_v56 = vand.u32 4294901760, %v276_v44 }
  0x53   : > { %v712_v42 = vand.u32 4294901760, %v711_v31  ;;  %v718_v25 = vand.u32 4294901760, %v717_v45  ;;  %689 = vmatpush1.msra.mxu1 %v688_v46  ;;  %v2457_v36 = vand.u32 4294901760, %v275_v43  ;;  %v2459_v40 = vand.u32 4294901760, %v274_v61 }
  0x54   : > { %3583 = vst [vmem:[#allocation41_spill] sm:$0xff] %v2452_v0  ;;  %v724_v47 = vand.u32 4294901760, %v723_v37  ;;  %3584 = vst [vmem:[#allocation42_spill] sm:$0xff] %v2455_v56  ;;  %695 = vmatprep.subr.mxu1 %v694_v57  ;;  %v2462_v35 = vsub.f32 %v277_v33, %v2452_v0  ;;  %v2464_v29 = vand.u32 4294901760, %v273_v39  ;;  %v2466_v31 = vand.u32 4294901760, %v272_v52  ;;  %438 = vmatprep.subr.mxu0 %v2452_v0  ;;  %v263_v0 = vld [vmem:[#allocation2 + $0x188] sm:$0xff] }
  0x55   : > { %3585 = vst [vmem:[#allocation43_spill] sm:$0xff] %v2457_v36  ;;  %3586 = vst [vmem:[#allocation44_spill] sm:$0xff] %v2459_v40  ;;  %v2468_v45 = vand.u32 4294901760, %v271_v51  ;;  %701 = vmatpush1.msra.mxu1 %v700_v62  ;;  %v2472_v23 = vsub.f32 %v276_v44, %v2455_v56  ;;  %v2475_v46 = vsub.f32 %v275_v43, %v2457_v36  ;;  %v2480_v33 = vand.u32 4294901760, %v270_v55 }
  0x56   : > { %3587 = vst [vmem:[#allocation45_spill] sm:$0xff] %v2462_v35  ;;  %3588 = vst [vmem:[#allocation46_spill] sm:$0xff] %v2464_v29  ;;  %v2478_v57 = vsub.f32 %v274_v61, %v2459_v40  ;;  %440 = vmatpush2.msra.mxu0 %v2455_v56  ;;  %707 = vmatprep.subr.mxu1 %v706_v59  ;;  %v2485_v30 = vsub.f32 %v273_v39, %v2464_v29  ;;  %v3599_v39 = vand.u32 4294901760, %v2462_v35  ;;  %v264_v56 = vld [vmem:[#allocation2 + $0x190] sm:$0xff] }
  0x57   : > { %3589 = vst [vmem:[#allocation47_spill] sm:$0xff] %v2466_v31  ;;  %3590 = vst [vmem:[#allocation48_spill] sm:$0xff] %v2468_v45  ;;  %v2488_v62 = vsub.f32 %v272_v52, %v2466_v31  ;;  %v2491_v44 = vsub.f32 %v271_v51, %v2468_v45  ;;  %442 = vmatprep.subr.mxu0 %v2457_v36  ;;  %713 = vmatpush1.msra.mxu1 %v712_v42  ;;  %v3394_v43 = vand.u32 4294901760, %v2475_v46  ;;  %v269_v42 = vld [vmem:[#allocation2 + $0x1b8] sm:$0xff] }
  0x58   : > { %3591 = vst [vmem:[#allocation49_spill] sm:$0xff] %v2472_v23  ;;  %3592 = vst [vmem:[#allocation50_spill] sm:$0xff] %v2475_v46  ;;  %v2498_v37 = vsub.f32 %v270_v55, %v2480_v33  ;;  %444 = vmatpush2.msra.mxu0 %v2459_v40  ;;  %719 = vmatprep.subr.mxu1 %v718_v25  ;;  %v729_v52 = vsub.f32 %v2462_v35, %v3599_v39  ;;  %v3600_v59 = vand.u32 4294901760, %v2472_v23 }
  0x59   : > { %3593 = vst [vmem:[#allocation51_spill] sm:$0xff] %v2478_v57  ;;  %3594 = vst [vmem:[#allocation52_spill] sm:$0xff] %v2480_v33  ;;  %446 = vmatprep.subr.mxu0 %v2464_v29  ;;  %725 = vmatpush1.msra.mxu1 %v724_v47  ;;  %v741_v25 = vsub.f32 %v2475_v46, %v3394_v43  ;;  %v3601_v40 = vand.u32 4294901760, %v2478_v57  ;;  %v3602_v47 = vand.u32 4294901760, %v2485_v30  ;;  %v3604_v43 = vand.u32 4294901760, %v2491_v44  ;;  %v268_v29 = vld [vmem:[#allocation2 + $0x1b0] sm:$0xff] }
  0x5a   : > { %3595 = vst [vmem:[#allocation53_spill] sm:$0xff] %v2485_v30  ;;  %3596 = vst [vmem:[#allocation54_spill] sm:$0xff] %v2488_v62  ;;  %v735_v55 = vsub.f32 %v2472_v23, %v3600_v59  ;;  %448 = vmatpush2.msra.mxu0 %v2466_v31  ;;  %v730_v61 = vand.u32 4294901760, %v729_v52  ;;  %v3603_v59 = vand.u32 4294901760, %v2488_v62  ;;  %v3605_v36 = vand.u32 4294901760, %v2498_v37 }
  0x5b   : > { %3597 = vst [vmem:[#allocation55_spill] sm:$0xff] %v2491_v44  ;;  %3598 = vst [vmem:[#allocation56_spill] sm:$0xff] %v2498_v37  ;;  %v747_v39 = vsub.f32 %v2478_v57, %v3601_v40  ;;  %v753_v35 = vsub.f32 %v2485_v30, %v3602_v47  ;;  %v765_v46 = vsub.f32 %v2491_v44, %v3604_v43  ;;  %v267_v40 = vld [vmem:[#allocation2 + $0x1a8] sm:$0xff]  ;;  %v266_v57 = vld [vmem:[#allocation2 + $0x1a0] sm:$0xff]  ;;  %450 = vmatprep.subr.mxu0 %v2468_v45 }
  0x5c   : > { %v759_v23 = vsub.f32 %v2488_v62, %v3603_v59  ;;  %v736_v51 = vand.u32 4294901760, %v735_v55  ;;  %v742_v31 = vand.u32 4294901760, %v741_v25  ;;  %v771_v47 = vsub.f32 %v2498_v37, %v3605_v36  ;;  %v265_v30 = vld [vmem:[#allocation2 + $0x198] sm:$0xff]  ;;  %452 = vmatpush2.msra.mxu0 %v2480_v33  ;;  %731 = vmatprep.subr.mxu1 %v730_v61  ;;  %v254_v33 = vld [vmem:[#allocation2 + $0x140] sm:$0xff] }
  0x5d   : > { %v748_v52 = vand.u32 4294901760, %v747_v39  ;;  %v754_v59 = vand.u32 4294901760, %v753_v35  ;;  %v766_v44 = vand.u32 4294901760, %v765_v46  ;;  %v2533_v62 = vand.u32 4294901760, %v269_v42 }
  0x5e   : > { %v760_v43 = vand.u32 4294901760, %v759_v23  ;;  %737 = vmatpush2.msra.mxu1 %v736_v51  ;;  %v772_v55 = vand.u32 4294901760, %v771_v47  ;;  %v2535_v25 = vand.u32 4294901760, %v268_v29  ;;  %v2537_v39 = vand.u32 4294901760, %v267_v40 }
  0x5f   : > { %3606 = vst [vmem:[#allocation57_spill] sm:$0xff] %v2533_v62  ;;  %v2539_v45 = vand.u32 4294901760, %v266_v57  ;;  %743 = vmatprep.subr.mxu1 %v742_v31  ;;  %v2542_v36 = vsub.f32 %v269_v42, %v2533_v62  ;;  %v2544_v37 = vand.u32 4294901760, %v265_v30  ;;  %v2546_v35 = vand.u32 4294901760, %v264_v56  ;;  %454 = vmatprep.subr.mxu0 %v2533_v62  ;;  %v255_v62 = vld [vmem:[#allocation2 + $0x148] sm:$0xff] }
  0x60   : > { %3607 = vst [vmem:[#allocation58_spill] sm:$0xff] %v2535_v25  ;;  %3608 = vst [vmem:[#allocation59_spill] sm:$0xff] %v2537_v39  ;;  %v2548_v23 = vand.u32 4294901760, %v263_v0  ;;  %749 = vmatpush2.msra.mxu1 %v748_v52  ;;  %v2552_v46 = vsub.f32 %v268_v29, %v2535_v25  ;;  %v2555_v61 = vsub.f32 %v267_v40, %v2537_v39  ;;  %v2560_v51 = vand.u32 4294901760, %v262_v48 }
  0x61   : > { %3609 = vst [vmem:[#allocation60_spill] sm:$0xff] %v2539_v45  ;;  %3610 = vst [vmem:[#allocation61_spill] sm:$0xff] %v2542_v36  ;;  %v2558_v31 = vsub.f32 %v266_v57, %v2539_v45  ;;  %456 = vmatpush2.msra.mxu0 %v2535_v25  ;;  %755 = vmatprep.subr.mxu1 %v754_v59  ;;  %v2565_v47 = vsub.f32 %v265_v30, %v2544_v37  ;;  %v3622_v30 = vand.u32 4294901760, %v2542_v36  ;;  %v256_v25 = vld [vmem:[#allocation2 + $0x150] sm:$0xff] }
  0x62   : > { %3611 = vst [vmem:[#allocation62_spill] sm:$0xff] %v2544_v37  ;;  %3612 = vst [vmem:[#allocation63_spill] sm:$0xff] %v2546_v35  ;;  %v2568_v52 = vsub.f32 %v264_v56, %v2546_v35  ;;  %v2571_v29 = vsub.f32 %v263_v0, %v2548_v23  ;;  %458 = vmatprep.subr.mxu0 %v2537_v39  ;;  %761 = vmatpush2.msra.mxu1 %v760_v43  ;;  %v3427_v40 = vand.u32 4294901760, %v2555_v61  ;;  %v261_v43 = vld [vmem:[#allocation2 + $0x178] sm:$0xff] }
  0x63   : > { %3613 = vst [vmem:[#allocation64_spill] sm:$0xff] %v2548_v23  ;;  %3614 = vst [vmem:[#allocation65_spill] sm:$0xff] %v2552_v46  ;;  %v2578_v42 = vsub.f32 %v262_v48, %v2560_v51  ;;  %460 = vmatpush2.msra.mxu0 %v2539_v45  ;;  %767 = vmatprep.subr.mxu1 %v766_v44  ;;  %v777_v0 = vsub.f32 %v2542_v36, %v3622_v30  ;;  %v3623_v59 = vand.u32 4294901760, %v2552_v46 }
  0x64   : > { %3615 = vst [vmem:[#allocation66_spill] sm:$0xff] %v2555_v61  ;;  %3616 = vst [vmem:[#allocation67_spill] sm:$0xff] %v2558_v31  ;;  %462 = vmatprep.subr.mxu0 %v2544_v37  ;;  %773 = vmatpush2.msra.mxu1 %v772_v55  ;;  %v789_v44 = vsub.f32 %v2555_v61, %v3427_v40  ;;  %v3624_v45 = vand.u32 4294901760, %v2558_v31  ;;  %v3625_v55 = vand.u32 4294901760, %v2565_v47  ;;  %v3627_v40 = vand.u32 4294901760, %v2571_v29  ;;  %v260_v37 = vld [vmem:[#allocation2 + $0x170] sm:$0xff] }
  0x65   : > { %3617 = vst [vmem:[#allocation68_spill] sm:$0xff] %v2560_v51  ;;  %3618 = vst [vmem:[#allocation69_spill] sm:$0xff] %v2565_v47  ;;  %v783_v48 = vsub.f32 %v2552_v46, %v3623_v59  ;;  %464 = vmatpush2.msra.mxu0 %v2546_v35  ;;  %v778_v57 = vand.u32 4294901760, %v777_v0  ;;  %v3626_v59 = vand.u32 4294901760, %v2568_v52  ;;  %v3628_v39 = vand.u32 4294901760, %v2578_v42 }
  0x66   : > { %3619 = vst [vmem:[#allocation70_spill] sm:$0xff] %v2568_v52  ;;  %3620 = vst [vmem:[#allocation71_spill] sm:$0xff] %v2571_v29  ;;  %v795_v30 = vsub.f32 %v2558_v31, %v3624_v45  ;;  %v801_v36 = vsub.f32 %v2565_v47, %v3625_v55  ;;  %v813_v61 = vsub.f32 %v2571_v29, %v3627_v40  ;;  %v259_v45 = vld [vmem:[#allocation2 + $0x168] sm:$0xff]  ;;  %v258_v31 = vld [vmem:[#allocation2 + $0x160] sm:$0xff]  ;;  %466 = vmatprep.subr.mxu0 %v2548_v23 }
  0x67   : > { %3621 = vst [vmem:[#allocation72_spill] sm:$0xff] %v2578_v42  ;;  %v807_v46 = vsub.f32 %v2568_v52, %v3626_v59  ;;  %v784_v56 = vand.u32 4294901760, %v783_v48  ;;  %v790_v35 = vand.u32 4294901760, %v789_v44  ;;  %v819_v55 = vsub.f32 %v2578_v42, %v3628_v39  ;;  %v257_v47 = vld [vmem:[#allocation2 + $0x158] sm:$0xff]  ;;  %468 = vmatpush2.msra.mxu0 %v2560_v51  ;;  %779 = vmatprep.subr.mxu1 %v778_v57 }
  0x68   : > { %v796_v0 = vand.u32 4294901760, %v795_v30  ;;  %v802_v59 = vand.u32 4294901760, %v801_v36  ;;  %v814_v29 = vand.u32 4294901760, %v813_v61  ;;  %v2613_v52 = vand.u32 4294901760, %v261_v43 }
  0x69   : > { %v808_v40 = vand.u32 4294901760, %v807_v46  ;;  %785 = vmatpush2.msra.mxu1 %v784_v56  ;;  %v820_v48 = vand.u32 4294901760, %v819_v55  ;;  %v2615_v44 = vand.u32 4294901760, %v260_v37  ;;  %v2617_v30 = vand.u32 4294901760, %v259_v45 }
  0x6a   : > { %3629 = vst [vmem:[#allocation73_spill] sm:$0xff] %v2613_v52  ;;  %v2619_v23 = vand.u32 4294901760, %v258_v31  ;;  %791 = vmatprep.subr.mxu1 %v790_v35  ;;  %v2622_v39 = vsub.f32 %v261_v43, %v2613_v52  ;;  %v2624_v42 = vand.u32 4294901760, %v257_v47  ;;  %v2626_v36 = vand.u32 4294901760, %v256_v25  ;;  %470 = vmatprep.subr.mxu0 %v2613_v52 }
  0x6b   : > { %3630 = vst [vmem:[#allocation74_spill] sm:$0xff] %v2615_v44  ;;  %3631 = vst [vmem:[#allocation75_spill] sm:$0xff] %v2617_v30  ;;  %v2628_v46 = vand.u32 4294901760, %v255_v62  ;;  %797 = vmatpush2.msra.mxu1 %v796_v0  ;;  %v2632_v61 = vsub.f32 %v260_v37, %v2615_v44  ;;  %v2635_v57 = vsub.f32 %v259_v45, %v2617_v30  ;;  %v2640_v56 = vand.u32 4294901760, %v254_v33 }
  0x6c   : > { %3632 = vst [vmem:[#allocation76_spill] sm:$0xff] %v2619_v23  ;;  %3633 = vst [vmem:[#allocation77_spill] sm:$0xff] %v2622_v39  ;;  %v2638_v35 = vsub.f32 %v258_v31, %v2619_v23  ;;  %472 = vmatpush2.msra.mxu0 %v2615_v44  ;;  %803 = vmatprep.subr.mxu1 %v802_v59  ;;  %v2645_v55 = vsub.f32 %v257_v47, %v2624_v42 }
  0x6d   : > { %3634 = vst [vmem:[#allocation78_spill] sm:$0xff] %v2624_v42  ;;  %3635 = vst [vmem:[#allocation79_spill] sm:$0xff] %v2626_v36  ;;  %v2648_v0 = vsub.f32 %v256_v25, %v2626_v36  ;;  %v2651_v37 = vsub.f32 %v255_v62, %v2628_v46  ;;  %474 = vmatprep.subr.mxu0 %v2617_v30  ;;  %809 = vmatpush2.msra.mxu1 %v808_v40  ;;  %v3460_v45 = vand.u32 4294901760, %v2635_v57  ;;  %v253_v40 = vld [vmem:[#allocation2 + $0x138] sm:$0xff] }
  0x6e   : > { %3636 = vst [vmem:[#allocation80_spill] sm:$0xff] %v2628_v46  ;;  %3637 = vst [vmem:[#allocation81_spill] sm:$0xff] %v2632_v61  ;;  %v2658_v43 = vsub.f32 %v254_v33, %v2640_v56  ;;  %476 = vmatpush2.msra.mxu0 %v2619_v23  ;;  %815 = vmatprep.subr.mxu1 %v814_v29  ;;  %v3645_v25 = vand.u32 4294901760, %v2622_v39  ;;  %v3646_v59 = vand.u32 4294901760, %v2632_v61  ;;  %v3647_v23 = vand.u32 4294901760, %v2638_v35 }
  0x6f   : > { %3638 = vst [vmem:[#allocation82_spill] sm:$0xff] %v2635_v57  ;;  %3639 = vst [vmem:[#allocation83_spill] sm:$0xff] %v2638_v35  ;;  %478 = vmatprep.subr.mxu0 %v2624_v42  ;;  %821 = vmatpush2.msra.mxu1 %v820_v48  ;;  %v837_v29 = vsub.f32 %v2635_v57, %v3460_v45  ;;  %v3648_v48 = vand.u32 4294901760, %v2645_v55  ;;  %v3650_v45 = vand.u32 4294901760, %v2651_v37  ;;  %v252_v42 = vld [vmem:[#allocation2 + $0x130] sm:$0xff] }
  0x70   : > { %3640 = vst [vmem:[#allocation84_spill] sm:$0xff] %v2640_v56  ;;  %3641 = vst [vmem:[#allocation85_spill] sm:$0xff] %v2645_v55  ;;  %v825_v62 = vsub.f32 %v2622_v39, %v3645_v25  ;;  %v831_v33 = vsub.f32 %v2632_v61, %v3646_v59  ;;  %v843_v25 = vsub.f32 %v2638_v35, %v3647_v23  ;;  %480 = vmatpush2.msra.mxu0 %v2626_v36  ;;  %v251_v23 = vld [vmem:[#allocation2 + $0x128] sm:$0xff]  ;;  %v250_v35 = vld [vmem:[#allocation2 + $0x120] sm:$0xff] }
  0x71   : > { %3642 = vst [vmem:[#allocation86_spill] sm:$0xff] %v2648_v0  ;;  %3643 = vst [vmem:[#allocation87_spill] sm:$0xff] %v2651_v37  ;;  %v849_v39 = vsub.f32 %v2645_v55, %v3648_v48  ;;  %v3649_v59 = vand.u32 4294901760, %v2648_v0  ;;  %v861_v57 = vsub.f32 %v2651_v37, %v3650_v45  ;;  %482 = vmatprep.subr.mxu0 %v2628_v46  ;;  %v838_v36 = vand.u32 4294901760, %v837_v29  ;;  %v249_v55 = vld [vmem:[#allocation2 + $0x118] sm:$0xff] }
  0x72   : > { %3644 = vst [vmem:[#allocation88_spill] sm:$0xff] %v2658_v43  ;;  %v826_v31 = vand.u32 4294901760, %v825_v62  ;;  %v832_v47 = vand.u32 4294901760, %v831_v33  ;;  %v844_v62 = vand.u32 4294901760, %v843_v25  ;;  %v3651_v30 = vand.u32 4294901760, %v2658_v43  ;;  %484 = vmatpush2.msra.mxu0 %v2640_v56 }
  0x73   : > { %v855_v61 = vsub.f32 %v2648_v0, %v3649_v59  ;;  %v850_v59 = vand.u32 4294901760, %v849_v39  ;;  %v2693_v0 = vand.u32 4294901760, %v253_v40  ;;  %v2695_v37 = vand.u32 4294901760, %v252_v42 }
  0x74   : > { %v867_v48 = vsub.f32 %v2658_v43, %v3651_v30  ;;  %827 = vmatprep.subr.mxu1 %v826_v31  ;;  %v2697_v44 = vand.u32 4294901760, %v251_v23  ;;  %v2699_v33 = vand.u32 4294901760, %v250_v35  ;;  %v862_v29 = vand.u32 4294901760, %v861_v57  ;;  %v248_v43 = vld [vmem:[#allocation2 + $0x110] sm:$0xff] }
  0x75   : > { %3652 = vst [vmem:[#allocation89_spill] sm:$0xff] %v2693_v0  ;;  %833 = vmatpush2.msra.mxu1 %v832_v47  ;;  %v856_v45 = vand.u32 4294901760, %v855_v61  ;;  %3653 = vst [vmem:[#allocation90_spill] sm:$0xff] %v2695_v37  ;;  %v2702_v25 = vsub.f32 %v253_v40, %v2693_v0  ;;  %v2704_v30 = vand.u32 4294901760, %v249_v55  ;;  %486 = vmatprep.subr.mxu0 %v2693_v0 }
  0x76   : > { %3654 = vst [vmem:[#allocation91_spill] sm:$0xff] %v2697_v44  ;;  %3655 = vst [vmem:[#allocation92_spill] sm:$0xff] %v2699_v33  ;;  %839 = vmatprep.subr.mxu1 %v838_v36  ;;  %v868_v39 = vand.u32 4294901760, %v867_v48  ;;  %v2708_v31 = vsub.f32 %v252_v42, %v2695_v37  ;;  %v2711_v61 = vsub.f32 %v251_v23, %v2697_v44  ;;  %488 = vmatpush2.msra.mxu0 %v2695_v37 }
  0x77   : > { %3656 = vst [vmem:[#allocation93_spill] sm:$0xff] %v2702_v25  ;;  %3657 = vst [vmem:[#allocation94_spill] sm:$0xff] %v2704_v30  ;;  %845 = vmatpush2.msra.mxu1 %v844_v62  ;;  %v2714_v47 = vsub.f32 %v250_v35, %v2699_v33  ;;  %v3479_v36 = vand.u32 4294901760, %v2702_v25  ;;  %v2719_v57 = vsub.f32 %v249_v55, %v2704_v30  ;;  %490 = vmatprep.subr.mxu0 %v2697_v44 }
  0x78   : > { %3658 = vst [vmem:[#allocation95_spill] sm:$0xff] %v2708_v31  ;;  %3659 = vst [vmem:[#allocation96_spill] sm:$0xff] %v2711_v61  ;;  %851 = vmatprep.subr.mxu1 %v850_v59  ;;  %v3488_v42 = vand.u32 4294901760, %v2708_v31  ;;  %v3489_v40 = vand.u32 4294901760, %v2711_v61  ;;  %492 = vmatpush2.msra.mxu0 %v2699_v33  ;;  %v246_v33 = vld [vmem:[#allocation2 + $0x100] sm:$0xff] }
  0x79   : > { %3660 = vst [vmem:[#allocation97_spill] sm:$0xff] %v2714_v47  ;;  %3661 = vst [vmem:[#allocation98_spill] sm:$0xff] %v2719_v57  ;;  %857 = vmatpush2.msra.mxu1 %v856_v45  ;;  %v3492_v23 = vand.u32 4294901760, %v2714_v47  ;;  %v873_v35 = vsub.f32 %v2702_v25, %v3479_v36  ;;  %v3494_v62 = vand.u32 4294901760, %v2719_v57  ;;  %494 = vmatprep.subr.mxu0 %v2704_v30  ;;  %v247_v30 = vld [vmem:[#allocation2 + $0x108] sm:$0xff] }
  0x7a   : > { %863 = vmatprep.subr.mxu1 %v862_v29  ;;  %v879_v55 = vsub.f32 %v2708_v31, %v3488_v42  ;;  %v885_v48 = vsub.f32 %v2711_v61, %v3489_v40  ;;  %v2743_v40 = vand.u32 4294901760, %v248_v43  ;;  %v2745_v61 = vand.u32 4294901760, %v247_v30 }
  0x7b   : > { %869 = vmatpush2.msra.mxu1 %v868_v39  ;;  %v891_v59 = vsub.f32 %v2714_v47, %v3492_v23  ;;  %v874_v45 = vand.u32 4294901760, %v873_v35  ;;  %v897_v29 = vsub.f32 %v2719_v57, %v3494_v62  ;;  %v2747_v23 = vand.u32 4294901760, %v246_v33 }
  0x7c   : > { %v880_v36 = vand.u32 4294901760, %v879_v55  ;;  %v886_v25 = vand.u32 4294901760, %v885_v48  ;;  %3662 = vst [vmem:[#allocation99_spill] sm:$0xff] %v2743_v40  ;;  %3663 = vst [vmem:[#allocation100_spill] sm:$0xff] %v2745_v61  ;;  %v2750_v35 = vsub.f32 %v248_v43, %v2743_v40  ;;  %v2753_v55 = vsub.f32 %v247_v30, %v2745_v61  ;;  %496 = vmatpush2.msra.mxu0 %v2743_v40 }
  0x7d   : > { %v892_v39 = vand.u32 4294901760, %v891_v59  ;;  %875 = vmatprep.subr.mxu1 %v874_v45  ;;  %v898_v42 = vand.u32 4294901760, %v897_v29  ;;  %3664 = vst [vmem:[#allocation101_spill] sm:$0xff] %v2747_v23  ;;  %v2756_v48 = vsub.f32 %v246_v33, %v2747_v23  ;;  %498 = vmatprep.subr.mxu0 %v2745_v61 }
  0x7e   : > { %881 = vmatpush2.msra.mxu1 %v880_v36  ;;  %3665 = vst [vmem:[#allocation102_spill] sm:$0xff] %v2750_v35  ;;  %3666 = vst [vmem:[#allocation103_spill] sm:$0xff] %v2753_v55  ;;  %v3495_v36 = vand.u32 4294901760, %v2753_v55  ;;  %500 = vmatpush2.msra.mxu0 %v2747_v23 }
  0x7f   : > { %887 = vmatprep.subr.mxu1 %v886_v25  ;;  %3667 = vst [vmem:[#allocation104_spill] sm:$0xff] %v2756_v48  ;;  %v3493_v25 = vand.u32 4294901760, %v2750_v35  ;;  %v3497_v59 = vand.u32 4294901760, %v2756_v48  ;;  %937 = vmatprep.subr.mxu0 %v2137_v14 }
  0x80   : > { %893 = vmatpush2.msra.mxu1 %v892_v39  ;;  %v909_v33 = vsub.f32 %v2753_v55, %v3495_v36  ;;  %v283_v39 = vlaneseq }
  0x81   : > { %899 = vmatprep.subr.mxu1 %v898_v42  ;;  %v903_v43 = vsub.f32 %v2750_v35, %v3493_v25  ;;  %v915_v30 = vsub.f32 %v2756_v48, %v3497_v59  ;;  %v278_v25 = vld [vmem:[%s3307_s1] ss:$2 sm:$0x3]  ;;  %v3668_v59 = vmov 0  }
  0x82   : > { %v910_v45 = vand.u32 4294901760, %v909_v33  ;;  %v284_v62 = vshrl.u32 %v283_v39, 7  ;;  %vm281_vm0 = vcmp.eq.s32.totalorder %v278_v25, 2  ;;  %vm309_vm1 = vcmp.eq.s32.totalorder %v278_v25, 1 }
  0x83   : > { %v904_v42 = vand.u32 4294901760, %v903_v43  ;;  %v916_v29 = vand.u32 4294901760, %v915_v30  ;;  %vm331_vm2 = vcmp.eq.s32.totalorder %v278_v25, 0  ;;  %v282_v43 = vsel %vm281_vm0, 1, %v3668_v59 }
  0x84   : > { %v285_v36 = vsub.s32 0, %v284_v62  ;;  %v289_v14 = vsub.s32 1, %v284_v62  ;;  %v310_v33 = vsel %vm309_vm1, 1, %v3668_v59  ;;  %v332_v30 = vsel %vm331_vm2, 1, %v3668_v59 }
  0x85   : > { %905 = vmatpush2.msra.mxu1 %v904_v42  ;;  %v1828_v39 = vld [vmem:[%s3307_s1 + $0x1] ss:$2 sm:$0x3]  ;;  %v3690_v59 = vmov 0 }
  0x86   : > { %911 = vmatprep.subr.mxu1 %v910_v45  ;;  %v286_v42 = vrot.slane %v282_v43, %v285_v36  ;;  %v290_v45 = vrot.slane %v282_v43, %v289_v14  ;;  %v314_v55 = vrot.slane %v310_v33, %v285_v36  ;;  %v318_v35 = vrot.slane %v310_v33, %v289_v14 }
  0x87   : > { %917 = vmatpush2.msra.mxu1 %v916_v29  ;;  %v336_v57 = vrot.slane %v332_v30, %v285_v36  ;;  %v340_v47 = vrot.slane %v332_v30, %v289_v14  ;;  %v360_v31 = vrot.slane %v1828_v39, %v289_v14  ;;  %v3681_v14 = vmov 0 }
  0x88   : > { %1149 = vmatprep.subr.mxu1 %v2128_v4  ;;  %vm2784_vm3 = vcmp.eq.s32.totalorder %v286_v42, 1  ;;  %vm2788_vm4 = vcmp.eq.s32.totalorder %v290_v45, 1  ;;  %vm2792_vm5 = vcmp.eq.s32.totalorder %v314_v55, 1  ;;  %vm2796_vm6 = vcmp.eq.s32.totalorder %v318_v35, 1 }
  0x89   : > { %vm2800_vm7 = vcmp.eq.s32.totalorder %v336_v57, 1  ;;  %vm2804_vm8 = vcmp.eq.s32.totalorder %v340_v47, 1  ;;  %v356_v45 = vrot.slane %v1828_v39, %v285_v36  ;;  %v3684_v39 = vmov 0 }
  0x8a   : > { %v3693_v30 = vmov 1.0  }
  0xa7   : > { %v295_v29 = vpop.permute.xlu0 %294  ;;  %v323_v48 = vpop.permute.xlu1 %322 }
  0xac   : > { %v301_v33 = vpop.permute.xlu0 %300  ;;  %v345_v4 = vpop.permute.xlu1 %344 }
  0xad   : > { %v305_v55 = vsel %vm2784_vm3, %v295_v29, %v301_v33  ;;  %v306_v35 = vsel %vm2788_vm4, %v295_v29, %v301_v33  ;;  %v2024_v29 = vmov 0.0  }
  0xae   : > { %v327_v23 = vsel %vm2792_vm5, %v323_v48, %v305_v55  ;;  %v328_v57 = vsel %vm2796_vm6, %v323_v48, %v306_v35  ;;  %v3517_v35 = vmov 1.0  }
  0xaf   : > { %v349_v47 = vsel %vm2800_vm7, %v345_v4, %v327_v23  ;;  %v350_v36 = vsel %vm2804_vm8, %v345_v4, %v328_v57 }
  0xb0   : > { %vm2820_vm9 = vcmp.eq.s32.totalorder %v349_v47, %v356_v45  ;;  %vm2824_vm10 = vcmp.eq.s32.totalorder %v350_v36, %v360_v31  ;;  %v304_v55 = vpop.permute.xlu0 %303 }
  0xb1   : > { %v3682_v14 = vsel %vm2820_vm9, 4294967295, %v3681_v14  ;;  %v3685_v39 = vsel %vm2824_vm10, 4294967295, %v3684_v39  ;;  %v1829_v33 = vsel %vm2820_vm9, 1.0, %v2024_v29  ;;  %v298_v48 = vpop.permute.xlu1 %297  ;;  %1833 = vmatprep.mubr.msk.f32.mxu1 %vm2824_vm10, %v3517_v35  ;;  %v1830_v4 = vsel %vm2824_vm10, 1.0, %v2024_v29 }
  0xb2   : > { %3683 = vst [vmem:[#allocation105_spill] sm:$0xff] %v3682_v14  ;;  %3686 = vst [vmem:[#allocation106_spill] sm:$0xff] %v3685_v39  ;;  %v2835_v23 = vsub.f32 %v1829_v33, %v1829_v33  ;;  %1834 = vmatmul.mubr.msk.f32.vlgmr.msra.gmra.mxu1 %vm2820_vm9, %v3517_v35  ;;  %v2840_v57 = vsub.f32 %v1830_v4, %v1830_v4  ;;  %v307_v33 = vsel %vm2784_vm3, %v298_v48, %v304_v55 }
  0xb3   : > { %1151 = vmatpush1.msra.mxu1 %v2130_v8  ;;  %v308_v14 = vsel %vm2788_vm4, %v298_v48, %v304_v55 }
  0xb4   : > { %1153 = vmatprep.subr.mxu1 %v2132_v9  ;;  %v503_v47 = vand.u32 4294901760, %v2840_v57  ;;  %v3522_v36 = vand.u32 4294901760, %v2835_v23 }
  0xb5   : > { %1155 = vmatpush1.msra.mxu1 %v2134_v10  ;;  %v348_v39 = vpop.permute.xlu0 %347 }
  0xb6   : > { %1157 = vmatprep.subr.mxu1 %v2139_v15  ;;  %v326_v4 = vpop.permute.xlu1 %325  ;;  %v504_v35 = vsub.f32 %v2840_v57, %v503_v47  ;;  %v510_v9 = vsub.f32 %v2835_v23, %v3522_v36  ;;  %v3687_v36 = vmov 0 }
  0xb7   : > { %v329_v8 = vsel %vm2792_vm5, %v326_v4, %v307_v33  ;;  %v330_v10 = vsel %vm2796_vm6, %v326_v4, %v308_v14  ;;  %1159 = vmatpush1.msra.mxu1 %v2141_v16  ;;  %v3696_v33 = vld [vmem:[#allocation20_spill] sm:$0xff]  ;;  %v3697_v4 = vld [vmem:[#allocation14_spill] sm:$0xff] }
  0xb8   : > { %1161 = vmatprep.subr.mxu1 %v2143_v17  ;;  %v351_v62 = vsel %vm2800_vm7, %v348_v39, %v329_v8  ;;  %v352_v25 = vsel %vm2804_vm8, %v348_v39, %v330_v10  ;;  %v505_v55 = vand.u32 4294901760, %v504_v35  ;;  %v511_v48 = vand.u32 4294901760, %v510_v9  ;;  %v3694_v35 = vld [vmem:[#allocation16_spill] sm:$0xff] }
  0xb9   : > { %vm2866_vm11 = vcmp.eq.s32.totalorder %v351_v62, %v356_v45  ;;  %vm2870_vm12 = vcmp.eq.s32.totalorder %v352_v25, %v360_v31  ;;  %1163 = vmatpush1.msra.mxu1 %v2155_v22  ;;  %v3698_v62 = vld [vmem:[#allocation25_spill] sm:$0xff]  ;;  %v3699_v25 = vld [vmem:[#allocation15_spill] sm:$0xff] }
  0xba   : > { %v3688_v36 = vsel %vm2866_vm11, 4294967295, %v3687_v36  ;;  %v3691_v59 = vsel %vm2870_vm12, 4294967295, %v3690_v59  ;;  %v1831_v43 = vsel %vm2866_vm11, 1.0, %v2024_v29  ;;  %v1832_v8 = vsel %vm2870_vm12, 1.0, %v2024_v29  ;;  %1165 = vmatprep.subr.mxu1 %v2208_v60  ;;  %506 = vmatprep.mubr.f32.mxu0 %v505_v55  ;;  %v3701_v55 = vld [vmem:[#allocation17_spill] sm:$0xff] }
  0xbb   : > { %3689 = vst [vmem:[#allocation107_spill] sm:$0xff] %v3688_v36  ;;  %3692 = vst [vmem:[#allocation108_spill] sm:$0xff] %v3691_v59  ;;  %v2880_v9 = vsub.f32 %v1832_v8, %v1832_v8  ;;  %v2882_v10 = vsub.f32 %v1831_v43, %v1831_v43  ;;  %1835 = vmatprep.mubr.msk.f32.mxu1 %vm2870_vm12, %v3693_v30  ;;  %1167 = vmatpush1.msra.mxu1 %v2210_v63  ;;  %v3703_v43 = vld [vmem:[#allocation18_spill] sm:$0xff]  ;;  %v3704_v8 = vld [vmem:[#allocation28_spill] sm:$0xff] }
  0xbc   : > { %512 = vmatmul.mubr.f32.vlgmr.msra.gmra.mxu0 %v511_v48  ;;  %1836 = vmatmul.mubr.msk.f32.gmra.mxu1 %vm2866_vm11, %v3693_v30  ;;  %v3702_v48 = vld [vmem:[#allocation27_spill] sm:$0xff]  ;;  %v3711_v36 = vld [vmem:[#allocation36_spill] sm:$0xff] }
  0xbd   : > { %940 = vmatpush1.msra.mxu0 %v2147_v19  ;;  %1169 = vmatprep.subr.mxu1 %v2212_v1  ;;  %v3524_v31 = vand.u32 4294901760, %v2880_v9  ;;  %v3523_v42 = vand.u32 4294901760, %v2882_v10  ;;  %v3712_v59 = vld [vmem:[#allocation24_spill] sm:$0xff] }
  0xbe   : > { %943 = vmatprep.subr.mxu0 %v2150_v20  ;;  %1171 = vmatpush1.msra.mxu1 %v2214_v2 }
  0xbf   : > { %1279 = vmatprep.mubr.f32.mxu1 %v503_v47  ;;  %946 = vmatpush1.msra.mxu0 %v2153_v21  ;;  %v520_v45 = vsub.f32 %v2880_v9, %v3524_v31  ;;  %v526_v14 = vsub.f32 %v2882_v10, %v3523_v42  ;;  %v3695_v47 = vld [vmem:[#allocation13_spill] sm:$0xff]  ;;  %v3709_v42 = vld [vmem:[#allocation32_spill] sm:$0xff]  ;;  %v3710_v31 = vld [vmem:[#allocation23_spill] sm:$0xff] }
  0xc0   : > { %1173 = vmatprep.subr.mxu1 %v2220_v5  ;;  %949 = vmatprep.subr.mxu0 %v2161_v26 }
  0xc1   : > { %1175 = vmatpush1.msra.mxu1 %v2222_v6  ;;  %952 = vmatpush1.msra.mxu0 %v2164_v27  ;;  %v521_v39 = vand.u32 4294901760, %v520_v45  ;;  %v527_v29 = vand.u32 4294901760, %v526_v14  ;;  %v3705_v45 = vld [vmem:[#allocation19_spill] sm:$0xff]  ;;  %v3706_v14 = vld [vmem:[#allocation30_spill] sm:$0xff] }
  0xc2   : > { %1177 = vmatprep.subr.mxu1 %v2224_v7  ;;  %955 = vmatprep.subr.mxu0 %v2167_v28 }
  0xc3   : > { %1179 = vmatpush1.msra.mxu1 %v2237_v18  ;;  %958 = vmatpush1.msra.mxu0 %v2173_v32 }
  0xc4   : > { %1181 = vmatprep.subr.mxu1 %v2288_v24  ;;  %961 = vmatprep.subr.mxu0 %v2218_v3 }
  0xc5   : > { %1183 = vmatpush1.msra.mxu1 %v2291_v49  ;;  %522 = vmatprep.mubr.f32.mxu0 %v521_v39  ;;  %v3707_v39 = vld [vmem:[#allocation21_spill] sm:$0xff] }
  0xc6   : > { %964 = vmatpush1.msra.mxu0 %v2229_v11  ;;  %1185 = vmatprep.subr.mxu1 %v2293_v41 }
  0xc7   : > { %528 = vmatmul.mubr.f32.gmra.mxu0 %v527_v29  ;;  %967 = vmatprep.subr.mxu0 %v2232_v12  ;;  %v3708_v29 = vld [vmem:[#allocation22_spill] sm:$0xff] }
  0xc8   : > { %1187 = vmatpush1.msra.mxu1 %v2295_v50  ;;  %970 = vmatpush1.msra.mxu0 %v2235_v13 }
  0xc9   : > { %1129 = vmatprep.mubr.f32.mxu0 %v2840_v57  ;;  %1189 = vmatprep.subr.mxu1 %v2301_v53  ;;  %v3700_v57 = vld [vmem:[#allocation26_spill] sm:$0xff] }
  0xca   : > { %973 = vmatprep.subr.mxu0 %v2242_v34  ;;  %1191 = vmatpush1.msra.mxu1 %v2303_v54 }
  0xcb   : > { %976 = vmatpush1.msra.mxu0 %v2245_v38  ;;  %1193 = vmatprep.subr.mxu1 %v3694_v35 }
  0xcc   : > { %979 = vmatprep.subr.mxu0 %v3695_v47  ;;  %1195 = vmatpush1.msra.mxu1 %v3696_v33 }
  0xcd   : > { %982 = vmatpush1.msra.mxu0 %v3697_v4  ;;  %1197 = vmatprep.subr.mxu1 %v3698_v62 }
  0xce   : > { %985 = vmatprep.subr.mxu0 %v3699_v25  ;;  %1199 = vmatpush1.msra.mxu1 %v3700_v57 }
  0xcf   : > { %988 = vmatpush1.msra.mxu0 %v3701_v55  ;;  %1201 = vmatprep.subr.mxu1 %v3702_v48 }
  0xd0   : > { %991 = vmatprep.subr.mxu0 %v3703_v43  ;;  %1203 = vmatpush1.msra.mxu1 %v3704_v8  ;;  %v3713_v43 = vld [vmem:[#allocation41_spill] sm:$0xff] }
  0xd1   : > { %994 = vmatpush1.msra.mxu0 %v3705_v45  ;;  %1205 = vmatprep.subr.mxu1 %v3706_v14  ;;  %v3714_v8 = vld [vmem:[#allocation29_spill] sm:$0xff]  ;;  %v3715_v45 = vld [vmem:[#allocation42_spill] sm:$0xff] }
  0xd2   : > { %997 = vmatprep.subr.mxu0 %v3707_v39  ;;  %1207 = vmatpush1.msra.mxu1 %v2385_v58  ;;  %v3716_v14 = vld [vmem:[#allocation33_spill] sm:$0xff]  ;;  %v3717_v39 = vld [vmem:[#allocation43_spill] sm:$0xff]  ;;  %v3718_v58 = vld [vmem:[#allocation34_spill] sm:$0xff] }
  0xd3   : > { %1000 = vmatpush1.msra.mxu0 %v3708_v29  ;;  %1209 = vmatprep.subr.mxu1 %v3709_v42  ;;  %v3719_v29 = vld [vmem:[#allocation44_spill] sm:$0xff]  ;;  %v3720_v42 = vld [vmem:[#allocation35_spill] sm:$0xff] }
  0xd4   : > { %1003 = vmatprep.subr.mxu0 %v3710_v31  ;;  %1211 = vmatpush1.msra.mxu1 %v3711_v36  ;;  %v3721_v31 = vld [vmem:[#allocation46_spill] sm:$0xff]  ;;  %v3722_v36 = vld [vmem:[#allocation37_spill] sm:$0xff] }
  0xd5   : > { %1006 = vmatpush1.msra.mxu0 %v3712_v59  ;;  %1213 = vmatprep.subr.mxu1 %v3713_v43  ;;  %v3723_v59 = vld [vmem:[#allocation47_spill] sm:$0xff]  ;;  %v3724_v43 = vld [vmem:[#allocation38_spill] sm:$0xff] }
  0xd6   : > { %1009 = vmatprep.subr.mxu0 %v3714_v8  ;;  %1215 = vmatpush2.msra.mxu1 %v3715_v45  ;;  %v3725_v8 = vld [vmem:[#allocation48_spill] sm:$0xff]  ;;  %v3726_v45 = vld [vmem:[#allocation39_spill] sm:$0xff] }
  0xd7   : > { %1012 = vmatpush1.msra.mxu0 %v3716_v14  ;;  %1217 = vmatprep.subr.mxu1 %v3717_v39  ;;  %v3727_v14 = vld [vmem:[#allocation52_spill] sm:$0xff] }
  0xd8   : > { %1015 = vmatprep.subr.mxu0 %v3718_v58  ;;  %1219 = vmatpush2.msra.mxu1 %v3719_v29  ;;  %v3728_v39 = vld [vmem:[#allocation40_spill] sm:$0xff]  ;;  %v3729_v58 = vld [vmem:[#allocation57_spill] sm:$0xff] }
  0xd9   : > { %1018 = vmatpush1.msra.mxu0 %v3720_v42  ;;  %1221 = vmatprep.subr.mxu1 %v3721_v31  ;;  %v3730_v29 = vld [vmem:[#allocation45_spill] sm:$0xff]  ;;  %v3731_v42 = vld [vmem:[#allocation58_spill] sm:$0xff] }
  0xda   : > { %1021 = vmatprep.subr.mxu0 %v3722_v36  ;;  %1223 = vmatpush2.msra.mxu1 %v3723_v59  ;;  %v3732_v31 = vld [vmem:[#allocation49_spill] sm:$0xff]  ;;  %v3733_v36 = vld [vmem:[#allocation59_spill] sm:$0xff]  ;;  %v3734_v59 = vld [vmem:[#allocation50_spill] sm:$0xff] }
  0xdb   : > { %1024 = vmatpush1.msra.mxu0 %v3724_v43  ;;  %1225 = vmatprep.subr.mxu1 %v3725_v8  ;;  %v3735_v43 = vld [vmem:[#allocation60_spill] sm:$0xff]  ;;  %v3736_v8 = vld [vmem:[#allocation51_spill] sm:$0xff] }
  0xdc   : > { %1027 = vmatprep.subr.mxu0 %v3726_v45  ;;  %1227 = vmatpush2.msra.mxu1 %v3727_v14  ;;  %v3737_v45 = vld [vmem:[#allocation62_spill] sm:$0xff]  ;;  %v3738_v14 = vld [vmem:[#allocation53_spill] sm:$0xff] }
  0xdd   : > { %1030 = vmatpush1.msra.mxu0 %v3728_v39  ;;  %1229 = vmatprep.subr.mxu1 %v3729_v58  ;;  %v3739_v39 = vld [vmem:[#allocation63_spill] sm:$0xff]  ;;  %v3740_v58 = vld [vmem:[#allocation54_spill] sm:$0xff] }
  0xde   : > { %1033 = vmatprep.subr.mxu0 %v3730_v29  ;;  %1231 = vmatpush2.msra.mxu1 %v3731_v42  ;;  %v3741_v29 = vld [vmem:[#allocation64_spill] sm:$0xff]  ;;  %v3742_v42 = vld [vmem:[#allocation55_spill] sm:$0xff] }
  0xdf   : > { %1036 = vmatpush2.msra.mxu0 %v3732_v31  ;;  %1233 = vmatprep.subr.mxu1 %v3733_v36  ;;  %v3743_v36 = vld [vmem:[#allocation56_spill] sm:$0xff] }
  0xe0   : > { %1039 = vmatprep.subr.mxu0 %v3734_v59  ;;  %1235 = vmatpush2.msra.mxu1 %v3735_v43  ;;  %v3744_v43 = vld [vmem:[#allocation61_spill] sm:$0xff] }
  0xe1   : > { %1042 = vmatpush2.msra.mxu0 %v3736_v8  ;;  %1237 = vmatprep.subr.mxu1 %v3737_v45  ;;  %v3745_v8 = vld [vmem:[#allocation74_spill] sm:$0xff]  ;;  %v3746_v45 = vld [vmem:[#allocation65_spill] sm:$0xff] }
  0xe2   : > { %1045 = vmatprep.subr.mxu0 %v3738_v14  ;;  %1239 = vmatpush2.msra.mxu1 %v3739_v39  ;;  %v3747_v14 = vld [vmem:[#allocation75_spill] sm:$0xff]  ;;  %v3748_v39 = vld [vmem:[#allocation66_spill] sm:$0xff] }
  0xe3   : > { %1048 = vmatpush2.msra.mxu0 %v3740_v58  ;;  %1241 = vmatprep.subr.mxu1 %v3741_v29  ;;  %v3749_v58 = vld [vmem:[#allocation76_spill] sm:$0xff]  ;;  %v3750_v29 = vld [vmem:[#allocation67_spill] sm:$0xff] }
  0xe4   : > { %1051 = vmatprep.subr.mxu0 %v3742_v42  ;;  %1243 = vmatpush2.msra.mxu1 %v2560_v51  ;;  %v3751_v42 = vld [vmem:[#allocation78_spill] sm:$0xff]  ;;  %v3752_v51 = vld [vmem:[#allocation69_spill] sm:$0xff] }
  0xe5   : > { %1054 = vmatpush2.msra.mxu0 %v3743_v36  ;;  %1245 = vmatprep.subr.mxu1 %v2613_v52  ;;  %v3753_v36 = vld [vmem:[#allocation79_spill] sm:$0xff]  ;;  %v3754_v52 = vld [vmem:[#allocation70_spill] sm:$0xff] }
  0xe6   : > { %1057 = vmatprep.subr.mxu0 %v3744_v43  ;;  %1247 = vmatpush2.msra.mxu1 %v3745_v8  ;;  %v3755_v8 = vld [vmem:[#allocation71_spill] sm:$0xff] }
  0xe7   : > { %1060 = vmatpush2.msra.mxu0 %v3746_v45  ;;  %1249 = vmatprep.subr.mxu1 %v3747_v14  ;;  %v3756_v14 = vld [vmem:[#allocation72_spill] sm:$0xff] }
  0xe8   : > { %1063 = vmatprep.subr.mxu0 %v3748_v39  ;;  %1251 = vmatpush2.msra.mxu1 %v3749_v58  ;;  %v3757_v58 = vld [vmem:[#allocation77_spill] sm:$0xff] }
  0xe9   : > { %1066 = vmatpush2.msra.mxu0 %v3750_v29  ;;  %1253 = vmatprep.subr.mxu1 %v3751_v42  ;;  %v3758_v42 = vld [vmem:[#allocation81_spill] sm:$0xff] }
  0xea   : > { %1069 = vmatprep.subr.mxu0 %v3752_v51  ;;  %1255 = vmatpush2.msra.mxu1 %v3753_v36  ;;  %v3759_v36 = vld [vmem:[#allocation82_spill] sm:$0xff] }
  0xeb   : > { %1072 = vmatpush2.msra.mxu0 %v3754_v52  ;;  %1257 = vmatprep.subr.mxu1 %v2628_v46  ;;  %v3760_v52 = vld [vmem:[#allocation92_spill] sm:$0xff]  ;;  %v3761_v46 = vld [vmem:[#allocation83_spill] sm:$0xff] }
  0xec   : > { %1075 = vmatprep.subr.mxu0 %v3755_v8  ;;  %1259 = vmatpush2.msra.mxu1 %v2640_v56  ;;  %v3762_v8 = vld [vmem:[#allocation94_spill] sm:$0xff]  ;;  %v3763_v56 = vld [vmem:[#allocation85_spill] sm:$0xff] }
  0xed   : > { %1078 = vmatpush2.msra.mxu0 %v3756_v14  ;;  %1261 = vmatprep.subr.mxu1 %v2693_v0  ;;  %v3764_v0 = vld [vmem:[#allocation86_spill] sm:$0xff] }
  0xee   : > { %1081 = vmatprep.subr.mxu0 %v3757_v58  ;;  %1263 = vmatpush2.msra.mxu1 %v2695_v37  ;;  %v3765_v37 = vld [vmem:[#allocation87_spill] sm:$0xff] }
  0xef   : > { %1084 = vmatpush2.msra.mxu0 %v3758_v42  ;;  %1265 = vmatprep.subr.mxu1 %v2697_v44  ;;  %v3766_v42 = vld [vmem:[#allocation101_spill] sm:$0xff]  ;;  %v3767_v44 = vld [vmem:[#allocation88_spill] sm:$0xff] }
  0xf0   : > { %1087 = vmatprep.subr.mxu0 %v3759_v36  ;;  %1267 = vmatpush2.msra.mxu1 %v3760_v52  ;;  %v3768_v52 = vand.u32 4294901760, %v2835_v23 }
  0xf1   : > { %1090 = vmatpush2.msra.mxu0 %v3761_v46  ;;  %1269 = vmatprep.subr.mxu1 %v3762_v8  ;;  %v3769_v46 = vld [vmem:[#allocation8_spill] sm:$0xff]  ;;  %v3770_v8 = vld [vmem:[#allocation93_spill] sm:$0xff] }
  0xf2   : > { %1093 = vmatprep.subr.mxu0 %v3763_v56  ;;  %1271 = vmatpush2.msra.mxu1 %v2743_v40  ;;  %v3771_v56 = vand.u32 4294901760, %v2880_v9  ;;  %v3772_v40 = vld [vmem:[#allocation9_spill] sm:$0xff] }
  0xf3   : > { %1096 = vmatpush2.msra.mxu0 %v3764_v0  ;;  %1273 = vmatprep.subr.mxu1 %v2745_v61  ;;  %v3773_v0 = vld [vmem:[#allocation95_spill] sm:$0xff]  ;;  %v3774_v61 = vld [vmem:[#allocation10_spill] sm:$0xff] }
  0xf4   : > { %1099 = vmatprep.subr.mxu0 %v3765_v37  ;;  %1275 = vmatpush2.msra.mxu1 %v3766_v42  ;;  %v3775_v37 = vld [vmem:[#allocation96_spill] sm:$0xff]  ;;  %v3776_v42 = vld [vmem:[#allocation11_spill] sm:$0xff] }
  0xf5   : > { %1102 = vmatpush2.msra.mxu0 %v3767_v44  ;;  %1283 = vmatmul.mubr.f32.vlgmr.msra.gmra.mxu1 %v3768_v52  ;;  %v3777_v44 = vld [vmem:[#allocation97_spill] sm:$0xff]  ;;  %v3778_v52 = vand.u32 4294901760, %v2882_v10 }
  0xf6   : > { %1575 = vmatprep.subr.mxu1 %v3769_v46  ;;  %1105 = vmatprep.subr.mxu0 %v3770_v8  ;;  %v3779_v46 = vld [vmem:[#allocation98_spill] sm:$0xff] }
  0xf7   : > { %1291 = vmatprep.mubr.f32.mxu1 %v3771_v56  ;;  %1577 = vmatpush1.msra.mxu1 %v3772_v40  ;;  %v3782_v40 = vld [vmem:[#allocation103_spill] sm:$0xff] }
  0xf8   : > { %1108 = vmatpush2.msra.mxu0 %v3773_v0  ;;  %1579 = vmatprep.subr.mxu1 %v3774_v61  ;;  %v3781_v61 = vld [vmem:[#allocation102_spill] sm:$0xff] }
  0xf9   : > { %1111 = vmatprep.subr.mxu0 %v3775_v37  ;;  %1581 = vmatpush1.msra.mxu1 %v3776_v42  ;;  %v3783_v42 = vld [vmem:[#allocation104_spill] sm:$0xff] }
  0xfa   : > { %1114 = vmatpush2.msra.mxu0 %v3777_v44  ;;  %1295 = vmatmul.mubr.f32.gmra.mxu1 %v3778_v52  ;;  %v3786_v52 = vand.u32 4294901760, %v2147_v19  ;;  %v3790_v19 = vand.u32 4294901760, %v2164_v27  ;;  %v3794_v27 = vand.u32 4294901760, %v2229_v11  ;;  %v3805_v11 = vld [vmem:[#allocation28_spill] sm:$0xff] }
  0xfb   : > { %1583 = vmatprep.subr.mxu1 %v2139_v15  ;;  %1117 = vmatprep.subr.mxu0 %v3779_v46  ;;  %v3784_v15 = vld [vmem:[#allocation12_spill] sm:$0xff] }
  0xfc   : > { %1585 = vmatpush1.msra.mxu1 %v2141_v16  ;;  %1841 = vmatprep.mubr.msk.f32.mxu1 %vm2824_vm10, %v3693_v30  ;;  %v3785_v16 = vand.u32 4294901760, %v3784_v15  ;;  %v3829_v15 = vld [vmem:[#allocation44_spill] sm:$0xff] }
  0xfd   : > { %1120 = vmatpush2.msra.mxu0 %v3781_v61  ;;  %1587 = vmatprep.subr.mxu1 %v2143_v17  ;;  %v3787_v17 = vand.u32 4294901760, %v2150_v20  ;;  %v3791_v20 = vand.u32 4294901760, %v2167_v28  ;;  %v3795_v28 = vand.u32 4294901760, %v2232_v12  ;;  %v3806_v12 = vld [vmem:[#allocation19_spill] sm:$0xff] }
  0xfe   : > { %1123 = vmatprep.subr.mxu0 %v3782_v40  ;;  %1589 = vmatpush1.msra.mxu1 %v2155_v22  ;;  %v3788_v22 = vand.u32 4294901760, %v2153_v21  ;;  %v3792_v21 = vand.u32 4294901760, %v2173_v32  ;;  %v3796_v32 = vand.u32 4294901760, %v2235_v13  ;;  %v3807_v13 = vand.u32 4294901760, %v3806_v12  ;;  %v3851_v12 = vld [vmem:[#allocation60_spill] sm:$0xff] }
  0xff   : > { %1126 = vmatpush2.msra.mxu0 %v3783_v42  ;;  %1591 = vmatprep.subr.mxu1 %v2208_v60  ;;  %v3789_v60 = vand.u32 4294901760, %v2161_v26  ;;  %v3793_v26 = vand.u32 4294901760, %v2218_v3  ;;  %v3801_v3 = vand.u32 4294901760, %v3699_v25  ;;  %v3824_v25 = vld [vmem:[#allocation33_spill] sm:$0xff] }
 0x100   : > { %1132 = vmatmul.mubr.f32.vlgmr.msra.gmra.mxu0 %v2835_v23  ;;  %1304 = vmatprep.subr.mxu0 %v3785_v16  ;;  %v3830_v16 = vld [vmem:[#allocation35_spill] sm:$0xff] }
 0x101   : > { %1593 = vmatpush1.msra.mxu1 %v2210_v63  ;;  %1139 = vmatprep.mubr.f32.mxu0 %v2880_v9  ;;  %v3797_v63 = vand.u32 4294901760, %v2242_v34  ;;  %v3817_v9 = vld [vmem:[#allocation36_spill] sm:$0xff] }
 0x102   : > { %1308 = vmatpush1.msra.mxu0 %v3786_v52  ;;  %1595 = vmatprep.subr.mxu1 %v2212_v1  ;;  %v3798_v1 = vand.u32 4294901760, %v2245_v38  ;;  %v3811_v38 = vld [vmem:[#allocation31_spill] sm:$0xff]  ;;  %v3831_v52 = vand.u32 4294901760, %v3830_v16  ;;  %v3879_v16 = vld [vmem:[#allocation80_spill] sm:$0xff] }
 0x103   : > { %1312 = vmatprep.subr.mxu0 %v3787_v17  ;;  %1597 = vmatpush1.msra.mxu1 %v2214_v2  ;;  %v3800_v2 = vand.u32 4294901760, %v3697_v4  ;;  %v3832_v17 = vld [vmem:[#allocation46_spill] sm:$0xff] }
 0x104   : > { %1316 = vmatpush1.msra.mxu0 %v3788_v22  ;;  %1599 = vmatprep.subr.mxu1 %v2220_v5  ;;  %v3802_v5 = vand.u32 4294901760, %v3701_v55  ;;  %v3826_v55 = vld [vmem:[#allocation43_spill] sm:$0xff]  ;;  %v3833_v22 = vld [vmem:[#allocation37_spill] sm:$0xff] }
 0x105   : > { %1142 = vmatmul.mubr.f32.gmra.mxu0 %v2882_v10  ;;  %1320 = vmatprep.subr.mxu0 %v3789_v60  ;;  %v3818_v10 = vld [vmem:[#allocation24_spill] sm:$0xff]  ;;  %v3834_v60 = vand.u32 4294901760, %v3833_v22  ;;  %v3884_v22 = vld [vmem:[#allocation89_spill] sm:$0xff] }
 0x106   : > { %1601 = vmatpush1.msra.mxu1 %v2222_v6  ;;  %1324 = vmatpush1.msra.mxu0 %v3790_v19  ;;  %v3803_v6 = vld [vmem:[#allocation18_spill] sm:$0xff]  ;;  %v3835_v19 = vld [vmem:[#allocation47_spill] sm:$0xff] }
 0x107   : > { %1837 = vmatprep.mubr.msk.f32.mxu0 %vm2824_vm10, %v3693_v30  ;;  %1603 = vmatprep.subr.mxu1 %v2224_v7  ;;  %v3804_v7 = vand.u32 4294901760, %v3803_v6  ;;  %v3848_v6 = vand.u32 4294901760, %v3732_v31 }
 0x108   : > { %1328 = vmatprep.subr.mxu0 %v3791_v20  ;;  %1605 = vmatpush1.msra.mxu1 %v2237_v18  ;;  %v3808_v18 = vld [vmem:[#allocation30_spill] sm:$0xff] }
 0x109   : > { %1332 = vmatpush1.msra.mxu0 %v3792_v21  ;;  %1607 = vmatprep.subr.mxu1 %v2288_v24  ;;  %v3809_v24 = vld [vmem:[#allocation21_spill] sm:$0xff]  ;;  %v3836_v20 = vld [vmem:[#allocation38_spill] sm:$0xff] }
 0x10a   : > { %1336 = vmatprep.subr.mxu0 %v3793_v26  ;;  %1609 = vmatpush1.msra.mxu1 %v2291_v49  ;;  %v3810_v34 = vand.u32 4294901760, %v3809_v24  ;;  %v3837_v21 = vand.u32 4294901760, %v3836_v20  ;;  %v3838_v26 = vld [vmem:[#allocation48_spill] sm:$0xff]  ;;  %v3854_v24 = vld [vmem:[#allocation62_spill] sm:$0xff] }
 0x10b   : > { %1340 = vmatpush1.msra.mxu0 %v3794_v27  ;;  %1611 = vmatprep.subr.mxu1 %v2293_v41  ;;  %v3799_v41 = vand.u32 4294901760, %v3695_v47  ;;  %v3820_v47 = vld [vmem:[#allocation41_spill] sm:$0xff]  ;;  %v3839_v27 = vld [vmem:[#allocation39_spill] sm:$0xff] }
 0x10c   : > { %1344 = vmatprep.subr.mxu0 %v3795_v28  ;;  %1613 = vmatpush1.msra.mxu1 %v2295_v50  ;;  %v3812_v50 = vld [vmem:[#allocation22_spill] sm:$0xff]  ;;  %v3840_v28 = vand.u32 4294901760, %v3839_v27  ;;  %v3891_v27 = vld [vmem:[#allocation92_spill] sm:$0xff] }
 0x10d   : > { %1348 = vmatpush1.msra.mxu0 %v3796_v32  ;;  %1615 = vmatprep.subr.mxu1 %v2301_v53  ;;  %v3813_v49 = vand.u32 4294901760, %v3812_v50  ;;  %v3814_v53 = vld [vmem:[#allocation32_spill] sm:$0xff]  ;;  %v3857_v50 = vld [vmem:[#allocation63_spill] sm:$0xff] }
 0x10e   : > { %1352 = vmatprep.subr.mxu0 %v3797_v63  ;;  %1617 = vmatpush1.msra.mxu1 %v2303_v54  ;;  %v3815_v54 = vld [vmem:[#allocation23_spill] sm:$0xff]  ;;  %v3841_v32 = vld [vmem:[#allocation52_spill] sm:$0xff] }
 0x10f   : > { %1356 = vmatpush1.msra.mxu0 %v3798_v1  ;;  %1619 = vmatprep.subr.mxu1 %v3694_v35  ;;  %v3816_v23 = vand.u32 4294901760, %v3815_v54  ;;  %v3819_v35 = vand.u32 4294901760, %v3818_v10  ;;  %v3842_v63 = vld [vmem:[#allocation40_spill] sm:$0xff]  ;;  %v3861_v54 = vld [vmem:[#allocation55_spill] sm:$0xff] }
 0x110   : > { %1360 = vmatprep.subr.mxu0 %v3799_v41  ;;  %1621 = vmatpush1.msra.mxu1 %v3696_v33  ;;  %v3821_v33 = vld [vmem:[#allocation29_spill] sm:$0xff]  ;;  %v3843_v1 = vand.u32 4294901760, %v3842_v63 }
 0x111   : > { %1364 = vmatpush1.msra.mxu0 %v3800_v2  ;;  %1623 = vmatprep.subr.mxu1 %v3698_v62  ;;  %v3822_v4 = vand.u32 4294901760, %v3821_v33  ;;  %v3823_v62 = vld [vmem:[#allocation42_spill] sm:$0xff]  ;;  %v3844_v41 = vld [vmem:[#allocation57_spill] sm:$0xff] }
 0x112   : > { %1368 = vmatprep.subr.mxu0 %v3801_v3  ;;  %1625 = vmatpush1.msra.mxu1 %v3700_v57  ;;  %v3825_v57 = vand.u32 4294901760, %v3824_v25  ;;  %v3845_v2 = vld [vmem:[#allocation45_spill] sm:$0xff]  ;;  %v3868_v33 = vld [vmem:[#allocation74_spill] sm:$0xff]  ;;  %v3871_v25 = vand.u32 4294901760, %v3748_v39 }
 0x113   : > { %1372 = vmatpush1.msra.mxu0 %v3802_v5  ;;  %1627 = vmatprep.subr.mxu1 %v3702_v48  ;;  %v3827_v48 = vld [vmem:[#allocation34_spill] sm:$0xff]  ;;  %v3846_v3 = vand.u32 4294901760, %v3845_v2  ;;  %v3895_v63 = vld [vmem:[#allocation85_spill] sm:$0xff] }
 0x114   : > { %1376 = vmatprep.subr.mxu0 %v3804_v7  ;;  %1629 = vmatpush1.msra.mxu1 %v3805_v11  ;;  %v3828_v56 = vand.u32 4294901760, %v3827_v48  ;;  %v3847_v5 = vld [vmem:[#allocation58_spill] sm:$0xff]  ;;  %v3849_v7 = vld [vmem:[#allocation59_spill] sm:$0xff]  ;;  %v3850_v11 = vand.u32 4294901760, %v3734_v59  ;;  %v3862_v59 = vand.u32 4294901760, %v3861_v54 }
 0x115   : > { %1380 = vmatpush1.msra.mxu0 %v3807_v13  ;;  %1631 = vmatprep.subr.mxu1 %v3808_v18  ;;  %v3852_v13 = vld [vmem:[#allocation51_spill] sm:$0xff]  ;;  %v3874_v48 = vld [vmem:[#allocation78_spill] sm:$0xff] }
 0x116   : > { %1384 = vmatprep.subr.mxu0 %v3810_v34  ;;  %1633 = vmatpush1.msra.mxu1 %v3811_v38  ;;  %v3853_v18 = vand.u32 4294901760, %v3852_v13  ;;  %v3855_v34 = vld [vmem:[#allocation53_spill] sm:$0xff]  ;;  %v3907_v13 = vand.u32 4294901760, %v3770_v8  ;;  %v3913_v8 = vand.u32 4294901760, %v3779_v46 }
 0x117   : > { %1388 = vmatpush1.msra.mxu0 %v3813_v49  ;;  %1635 = vmatprep.subr.mxu1 %v3814_v53  ;;  %v3856_v38 = vand.u32 4294901760, %v3855_v34  ;;  %v3858_v49 = vld [vmem:[#allocation54_spill] sm:$0xff]  ;;  %v3860_v53 = vld [vmem:[#allocation64_spill] sm:$0xff]  ;;  %v3910_v34 = vand.u32 4294901760, %v3775_v37 }
 0x118   : > { %1392 = vmatprep.subr.mxu0 %v3816_v23  ;;  %1637 = vmatpush1.msra.mxu1 %v3817_v9  ;;  %v3859_v31 = vand.u32 4294901760, %v3858_v49  ;;  %v3863_v23 = vld [vmem:[#allocation68_spill] sm:$0xff]  ;;  %v3914_v49 = vand.u32 4294901760, %v3781_v61 }
 0x119   : > { %1396 = vmatpush1.msra.mxu0 %v3819_v35  ;;  %1639 = vmatprep.subr.mxu1 %v3820_v47  ;;  %v3864_v9 = vld [vmem:[#allocation56_spill] sm:$0xff]  ;;  %v3866_v35 = vld [vmem:[#allocation73_spill] sm:$0xff]  ;;  %v3867_v47 = vand.u32 4294901760, %v3744_v43  ;;  %v3875_v43 = vand.u32 4294901760, %v3752_v51  ;;  %v3885_v51 = vand.u32 4294901760, %v3757_v58  ;;  %v3896_v58 = vand.u32 4294901760, %v3895_v63 }
 0x11a   : > { %1400 = vmatprep.subr.mxu0 %v3822_v4  ;;  %1641 = vmatpush2.msra.mxu1 %v3823_v62  ;;  %v3865_v10 = vand.u32 4294901760, %v3864_v9  ;;  %v3869_v4 = vand.u32 4294901760, %v3746_v45  ;;  %v3870_v62 = vld [vmem:[#allocation75_spill] sm:$0xff] }
 0x11b   : > { %1404 = vmatpush1.msra.mxu0 %v3825_v57  ;;  %1643 = vmatprep.subr.mxu1 %v3826_v55  ;;  %v3872_v57 = vld [vmem:[#allocation76_spill] sm:$0xff]  ;;  %v3873_v55 = vand.u32 4294901760, %v3750_v29  ;;  %v3883_v29 = vand.u32 4294901760, %v3756_v14 }
 0x11c   : > { %1408 = vmatprep.subr.mxu0 %v3828_v56  ;;  %1645 = vmatpush2.msra.mxu1 %v3829_v15  ;;  %v3876_v56 = vld [vmem:[#allocation79_spill] sm:$0xff]  ;;  %v3877_v15 = vld [vmem:[#allocation70_spill] sm:$0xff] }
 0x11d   : > { %1412 = vmatpush1.msra.mxu0 %v3831_v52  ;;  %1647 = vmatprep.subr.mxu1 %v3832_v17  ;;  %v3878_v45 = vand.u32 4294901760, %v3877_v15  ;;  %v3880_v52 = vld [vmem:[#allocation71_spill] sm:$0xff]  ;;  %v3882_v17 = vld [vmem:[#allocation84_spill] sm:$0xff] }
 0x11e   : > { %1416 = vmatprep.subr.mxu0 %v3834_v60  ;;  %1649 = vmatpush2.msra.mxu1 %v3835_v19  ;;  %v3881_v39 = vand.u32 4294901760, %v3880_v52  ;;  %v3886_v60 = vld [vmem:[#allocation90_spill] sm:$0xff]  ;;  %v3887_v19 = vld [vmem:[#allocation81_spill] sm:$0xff] }
 0x11f   : > { %1420 = vmatpush1.msra.mxu0 %v3837_v21  ;;  %1651 = vmatprep.subr.mxu1 %v3838_v26  ;;  %v3888_v20 = vand.u32 4294901760, %v3887_v19  ;;  %v3889_v21 = vld [vmem:[#allocation91_spill] sm:$0xff]  ;;  %v3890_v26 = vand.u32 4294901760, %v3759_v36 }
 0x120   : > { %1424 = vmatprep.subr.mxu0 %v3840_v28  ;;  %1653 = vmatpush2.msra.mxu1 %v3841_v32  ;;  %v3892_v28 = vld [vmem:[#allocation83_spill] sm:$0xff]  ;;  %v3894_v32 = vld [vmem:[#allocation94_spill] sm:$0xff] }
 0x121   : > { %1428 = vmatpush1.msra.mxu0 %v3843_v1  ;;  %1655 = vmatprep.subr.mxu1 %v3844_v41  ;;  %v3893_v14 = vand.u32 4294901760, %v3892_v28  ;;  %v3897_v1 = vld [vmem:[#allocation99_spill] sm:$0xff]  ;;  %v3898_v41 = vld [vmem:[#allocation86_spill] sm:$0xff] }
 0x122   : > { %1432 = vmatprep.subr.mxu0 %v3846_v3  ;;  %1657 = vmatpush2.msra.mxu1 %v3847_v5  ;;  %v3899_v2 = vand.u32 4294901760, %v3898_v41  ;;  %v3900_v3 = vld [vmem:[#allocation100_spill] sm:$0xff]  ;;  %v3901_v5 = vld [vmem:[#allocation87_spill] sm:$0xff] }
 0x123   : > { %1436 = vmatpush2.msra.mxu0 %v3848_v6  ;;  %1659 = vmatprep.subr.mxu1 %v3849_v7  ;;  %v3902_v36 = vand.u32 4294901760, %v3901_v5  ;;  %v3903_v6 = vld [vmem:[#allocation101_spill] sm:$0xff]  ;;  %v3904_v7 = vld [vmem:[#allocation88_spill] sm:$0xff] }
 0x124   : > { %1440 = vmatprep.subr.mxu0 %v3850_v11  ;;  %1661 = vmatpush2.msra.mxu1 %v3851_v12  ;;  %v3905_v11 = vand.u32 4294901760, %v3904_v7 }
 0x125   : > { %1444 = vmatpush2.msra.mxu0 %v3853_v18  ;;  %1663 = vmatprep.subr.mxu1 %v3854_v24  ;;  %v3909_v24 = vand.u32 4294901760, %v3773_v0  ;;  %v3916_v0 = vand.u32 4294901760, %v3783_v42 }
 0x126   : > { %1448 = vmatprep.subr.mxu0 %v3856_v38  ;;  %1665 = vmatpush2.msra.mxu1 %v3857_v50  ;;  %v3911_v38 = vand.u32 4294901760, %v3777_v44 }
 0x127   : > { %1452 = vmatpush2.msra.mxu0 %v3859_v31  ;;  %1667 = vmatprep.subr.mxu1 %v3860_v53  ;;  %v3915_v31 = vand.u32 4294901760, %v3782_v40 }
 0x128   : > { %1456 = vmatprep.subr.mxu0 %v3862_v59  ;;  %1669 = vmatpush2.msra.mxu1 %v3863_v23 }
 0x129   : > { %1460 = vmatpush2.msra.mxu0 %v3865_v10  ;;  %1671 = vmatprep.subr.mxu1 %v3866_v35 }
 0x12a   : > { %1464 = vmatprep.subr.mxu0 %v3867_v47  ;;  %1673 = vmatpush2.msra.mxu1 %v3868_v33 }
 0x12b   : > { %1468 = vmatpush2.msra.mxu0 %v3869_v4  ;;  %1675 = vmatprep.subr.mxu1 %v3870_v62 }
 0x12c   : > { %1472 = vmatprep.subr.mxu0 %v3871_v25  ;;  %1677 = vmatpush2.msra.mxu1 %v3872_v57 }
 0x12d   : > { %1476 = vmatpush2.msra.mxu0 %v3873_v55  ;;  %1679 = vmatprep.subr.mxu1 %v3874_v48 }
 0x12e   : > { %1480 = vmatprep.subr.mxu0 %v3875_v43  ;;  %1681 = vmatpush2.msra.mxu1 %v3876_v56 }
 0x12f   : > { %1484 = vmatpush2.msra.mxu0 %v3878_v45  ;;  %1683 = vmatprep.subr.mxu1 %v3879_v16 }
 0x130   : > { %1488 = vmatprep.subr.mxu0 %v3881_v39  ;;  %1685 = vmatpush2.msra.mxu1 %v3882_v17 }
 0x131   : > { %1492 = vmatpush2.msra.mxu0 %v3883_v29  ;;  %1687 = vmatprep.subr.mxu1 %v3884_v22 }
 0x132   : > { %1496 = vmatprep.subr.mxu0 %v3885_v51  ;;  %1689 = vmatpush2.msra.mxu1 %v3886_v60 }
 0x133   : > { %1500 = vmatpush2.msra.mxu0 %v3888_v20  ;;  %1691 = vmatprep.subr.mxu1 %v3889_v21 }
 0x134   : > { %1504 = vmatprep.subr.mxu0 %v3890_v26  ;;  %1693 = vmatpush2.msra.mxu1 %v3891_v27 }
 0x135   : > { %1508 = vmatpush2.msra.mxu0 %v3893_v14  ;;  %1695 = vmatprep.subr.mxu1 %v3894_v32 }
 0x136   : > { %1512 = vmatprep.subr.mxu0 %v3896_v58  ;;  %1697 = vmatpush2.msra.mxu1 %v3897_v1 }
 0x137   : > { %1516 = vmatpush2.msra.mxu0 %v3899_v2  ;;  %1699 = vmatprep.subr.mxu1 %v3900_v3 }
 0x138   : > { %1520 = vmatprep.subr.mxu0 %v3902_v36  ;;  %1701 = vmatpush2.msra.mxu1 %v3903_v6 }
 0x139   : > { %1524 = vmatpush2.msra.mxu0 %v3905_v11  ;;  %1842 = vmatmul.mubr.msk.f32.vlgmr.msra.gmra.mxu1 %vm2820_vm9, %v3693_v30 }
 0x13a   : > { %1528 = vmatprep.subr.mxu0 %v3907_v13  ;;  %1843 = vmatprep.mubr.msk.f32.mxu1 %vm2870_vm12, %v3693_v30 }
 0x13b   : > { %1532 = vmatpush2.msra.mxu0 %v3909_v24 }
 0x13c   : > { %1536 = vmatprep.subr.mxu0 %v3910_v34 }
 0x13d   : > { %1540 = vmatpush2.msra.mxu0 %v3911_v38  ;;  %1844 = vmatmul.mubr.msk.f32.gmra.mxu1 %vm2866_vm11, %v3693_v30 }
 0x13e   : > { %1544 = vmatprep.subr.mxu0 %v3913_v8 }
 0x13f   : > { %1548 = vmatpush2.msra.mxu0 %v3914_v49 }
 0x140   : > { %1552 = vmatprep.subr.mxu0 %v3915_v31 }
 0x141   : > { %1556 = vmatpush2.msra.mxu0 %v3916_v0 }
 0x142   : > { %1838 = vmatmul.mubr.msk.f32.vlgmr.msra.gmra.mxu0 %vm2820_vm9, %v3693_v30 }
 0x143   : > { %1839 = vmatprep.mubr.msk.f32.mxu0 %vm2870_vm12, %v3693_v30 }
 0x146   : > { %1840 = vmatmul.mubr.msk.f32.gmra.mxu0 %vm2866_vm11, %v3693_v30 }
 0x172   : > { %v922_v44 = vpop.f32.mrf.mxu1 }
 0x174   : > { %v924_v37 = vpop.f32.mrf.mxu1 }
 0x17c   : > { %v513_v46 = vpop.f32.mrf.mxu0  ;;  %v930_v61 = vpop.f32.mrf.mxu1 }
 0x17d   : > { %v923_v47 = vadd.f32 %v922_v44, %v513_v46 }
 0x17e   : > { %v515_v40 = vpop.f32.mrf.mxu0  ;;  %v932_v42 = vpop.f32.mrf.mxu1 }
 0x17f   : > { %v925_v62 = vadd.f32 %v924_v37, %v515_v40 }
 0x187   : > { %v529_v53 = vpop.f32.mrf.mxu0 }
 0x188   : > { %v931_v57 = vadd.f32 %v930_v61, %v529_v53 }
 0x189   : > { %v531_v59 = vpop.f32.mrf.mxu0 }
 0x18a   : > { %v933_v43 = vadd.f32 %v932_v42, %v531_v59 }
 0x1b5   : > { %v1284_v54 = vpop.f32.mrf.mxu1 }
 0x1b7   : > { %v1286_v23 = vpop.f32.mrf.mxu1 }
 0x1ba   : > { %v1296_v10 = vpop.f32.mrf.mxu1 }
 0x1bc   : > { %v1298_v33 = vpop.f32.mrf.mxu1 }
 0x1c0   : > { %v1133_v9 = vpop.f32.mrf.mxu0 }
 0x1c1   : > { %v1134_v30 = vadd.f32 %v1133_v9, %v923_v47 }
 0x1c2   : > { %v1135_v35 = vpop.f32.mrf.mxu0 }
 0x1c3   : > { %v1136_v55 = vadd.f32 %v1135_v35, %v925_v62  ;;  %v1285_v15 = vadd.f32 %v1284_v54, %v1134_v30 }
 0x1c5   : > { %v1143_v4 = vpop.f32.mrf.mxu0  ;;  %v1287_v17 = vadd.f32 %v1286_v23, %v1136_v55 }
 0x1c6   : > { %v1144_v56 = vadd.f32 %v1143_v4, %v931_v57 }
 0x1c7   : > { %v1145_v48 = vpop.f32.mrf.mxu0 }
 0x1c8   : > { %v1146_v52 = vadd.f32 %v1145_v48, %v933_v43  ;;  %v1297_v60 = vadd.f32 %v1296_v10, %v1144_v56 }
 0x1ca   : > { %v1299_v27 = vadd.f32 %v1298_v33, %v1146_v52 }
 0x1f9   : > { %v1706_v25 = vpop.f32.mrf.mxu1 }
 0x1fb   : > { %v1708_v45 = vpop.f32.mrf.mxu1 }
 0x1fd   : > { %v1714_v19 = vpop.f32.mrf.mxu1 }
 0x1ff   : > { %v1716_v63 = vpop.f32.mrf.mxu1 }
 0x202   : > { %v1561_v16 = vpop.f32.mrf.mxu0 }
 0x203   : > { %v1562_v39 = vadd.f32 %v1561_v16, %v1285_v15 }
 0x204   : > { %v1563_v29 = vpop.f32.mrf.mxu0 }
 0x205   : > { %v1707_v22 = vadd.f32 %v1706_v25, %v1562_v39  ;;  %v1564_v51 = vadd.f32 %v1563_v29, %v1287_v17 }
 0x206   : > { %v1569_v20 = vpop.f32.mrf.mxu0 }
 0x207   : > { %1719 = vst [vmem:[%s191_s26] sm:$0xff] %v1707_v22  ;;  %v1709_v21 = vadd.f32 %v1708_v45, %v1564_v51  ;;  %v1570_v26 = vadd.f32 %v1569_v20, %v1297_v60 }
 0x208   : > { %v1571_v28 = vpop.f32.mrf.mxu0 }
 0x209   : > { %1720 = vst [vmem:[%s191_s26 + $0x8] sm:$0xff] %v1709_v21  ;;  %v1715_v14 = vadd.f32 %v1714_v19, %v1570_v26  ;;  %v1572_v32 = vadd.f32 %v1571_v28, %v1299_v27  ;;  %1730 = sbr.rel (!%p2087_p5) target bundleno = 553 (0x229), region = 40 }
 0x20b   : > { %1721 = vst [vmem:[%s191_s26 + $0x10] sm:$0xff] %v1715_v14  ;;  %v1717_v58 = vadd.f32 %v1716_v63, %v1572_v32 }
 0x20d   : > { %1722 = vst [vmem:[%s191_s26 + $0x18] sm:$0xff] %v1717_v58 }
 0x20e   : > { %s3923_s28 = smov (!%p1733_p8, %s1732_s28), 2 }
 0x20f   : > { %s3252_s29 = sshll.u32 %s3923_s28, 8 }
 0x210   : > { %s1738_s30 = ssub.s32 512, %s3252_s29 }
 0x211   : > { %1739 = vsyncadd %s3247_s27, %s1738_s30  ;;  %p1849_p9 = scmp.ne.s32.totalorder %s3252_s29, 0  ;;  %s1858_s4 = sshll.u32 %s2070_s16, 9 }
 0x212   : > { %s3261_s22 = scalar_lea.hbm %s3309_s3, %s1858_s4  ;;  %s1745_s8 = sshll.u32 %s191_s26, 4  ;;  %s3263_s8 = int_to_ptr.vmem [resolvable:$true] %s1745_s8 }
 0x213   : > { %s1951_s5 = scalar_lea.vmem %s3263_s8, %s3252_s29  ;;  %s2026_s9 = smov [#allocation5]  }
 0x214   : > { %p1952_p5 = scmp.ne.s32.totalorder %s3263_s8, %s1951_s5  ;;  %s1955_s10 = sshll.u32 %s2026_s9, 4  ;;  %s1956_s10 = int_to_ptr.vmem [resolvable:$false] %s1955_s10 }
 0x215   : > { %s1957_s16 = scalar_lea.vmem %s1956_s10, 1024  ;;  %p1958_p12 = scmp.lt.s32.totalorder %s3263_s8, %s1956_s10 }
 0x216   : > { %p1953_p10 = pnand %p1952_p5, %p1849_p9  ;;  %p1959_p13 = scmp.lt.s32.totalorder %s1957_s16, %s1951_s5 }
 0x218   : > { %p1954_p11 = pneg %p1953_p10  ;;  %p1960_p0 = por %p1959_p13, %p1958_p12 }
 0x21a   : > { %p1961_p1 = pnand %p1960_p0, %p1954_p11 }
 0x21c   : > { %1964 = shalt.err (!%p1961_p1)
}
 0x21d   : > { %s1965_s11 = scalar_lea.hbm %s3261_s22, %s3252_s29  ;;  %s1969_s20 = scalar_lea.hbm %s3309_s3, 768 }
 0x21e   : > { %p1966_p2 = scmp.ne.s32.totalorder %s3261_s22, %s1965_s11  ;;  %p1970_p7 = scmp.lt.s32.totalorder %s3261_s22, %s3309_s3 }
 0x21f   : > { %p1971_p6 = scmp.lt.s32.totalorder %s1969_s20, %s1965_s11 }
 0x220   : > { %p1967_p3 = pnand %p1966_p2, %p1849_p9 }
 0x221   : > { %p1972_p8 = por %p1971_p6, %p1970_p7 }
 0x222   : > { %p1968_p4 = pneg %p1967_p3 }
 0x224   : > { %p1973_p5 = pnand %p1972_p8, %p1968_p4 }
 0x226   : > { %1976 = shalt.err (!%p1973_p5)
}
 0x227   : > { %s2027_s26 = smov 256   ;;  %s2028_s28 = smov 16  }
 0x228   : > { %1751 = dma.vmem_to_hbm [thread:$0]  (%p1849_p9), %s3263_s8, %s3252_s29, %s3261_s22, %s3247_s27, %s2027_s26, %s2027_s26, %s2028_s28  }
 0x229 PF: > { %p1874_p10 = scmp.ge.s32.totalorder %s2015_s15, 2  ;;  %s1760_s30 = sand.u32 1, %s2003_s12  }
 0x22a   : > { %p3917_p11 = scmp.ne.s32.totalorder %s3540_s23, 0  ;;  %s1761_s4 = scalar_lea.sflag [#allocation4], %s1760_s30 }
 0x22c   : > { %p1869_p12 = pnand %p1874_p10, %p3917_p11 }
 0x22e   : > { %p1870_p13 = pneg %p1869_p12 }
 0x230   : > { %1998 = dma.done.wait (%p1870_p13), %s1761_s4, 512  }
 0x231   : > { %2000 = vsyncadd (%p1870_p13), %s1761_s4, 4294966784  ;;  %p14_p0 = scmp.ge.s32.totalorder %s2074_s18, 4   ;;  %s3918_s12 = smov %s2007_s13 }
 0x232   : > { %s3919_s13 = smov %s2011_s14  ;;  %s3920_s14 = smov %s2085_s21 }
 0x233   : > { %s3921_s15 = smov %s2074_s18  ;;  %16 = sbr.rel (!%p14_p0) target bundleno = 4 (0x4), region = 73 }
 0x238   :  { %1766 = vsyncpa [#allocation3], 1 }
 0x239   :  { %1768 = vsyncpa [#allocation3 + $0x1], 1 }
 0x23a   :  { %1769 = vsyncpa [#allocation4], 1 }
 0x23b   :  { %1771 = vsyncpa [#allocation4 + $0x1], 1 }

</bundles_post_ra>
